<compile_context>
chip_gen: v6e
topology: v6e:2x2x1
jax: 0.10.0
libtpu: 0.0.40
codegen_flags: <defaults>
</compile_context>

<pallas_src>
import functools
import math

import jax
import jax.numpy as jnp
from jax.experimental import pallas as pl
from jax.experimental.pallas import tpu as pltpu


# -----------------------------------------------------------------------------
# small helpers
# -----------------------------------------------------------------------------
def _exact_gelu(x):
    # Exact BERT GELU: x * 0.5 * (1 + erf(x / sqrt(2))).
    return 0.5 * x * (1.0 + jax.lax.erf(x * (1.0 / math.sqrt(2.0))))


def _probe_gelu_in_mosaic():
    """True iff erf-based GELU lowers inside a Mosaic kernel on this jax/libtpu."""
    def _k(x_ref, o_ref):
        o_ref[...] = _exact_gelu(x_ref[...])
    try:
        f = pl.pallas_call(_k, out_shape=jax.ShapeDtypeStruct((8, 128), jnp.float32))
        jax.jit(f).lower(jnp.zeros((8, 128), jnp.float32)).compile()
        return True
    except Exception:
        return False


def _pick_tile(dim, pref, align):
    """Largest tile <= pref that divides dim and is `align`-aligned; else full dim."""
    if dim <= pref:
        return dim
    t = pref
    while t >= align:
        if dim % t == 0:
            return t
        t //= 2
    return dim


# -----------------------------------------------------------------------------
# tiled linear:  o = act(x @ W (+ b))  or  o = act(x @ W^T (+ b))
# -----------------------------------------------------------------------------
def _linear_kernel(x_ref, w_ref, b_ref, o_ref, acc_ref, *, activation, transpose_rhs):
    k = pl.program_id(2)

    @pl.when(k == 0)
    def _():
        acc_ref[...] = jnp.zeros_like(acc_ref)

    if transpose_rhs:
        acc_ref[...] += jax.lax.dot_general(
            x_ref[...], w_ref[...],
            dimension_numbers=(((1,), (1,)), ((), ())),
            preferred_element_type=jnp.float32)
    else:
        acc_ref[...] += jnp.dot(x_ref[...], w_ref[...],
                                preferred_element_type=jnp.float32)

    @pl.when(k == pl.num_programs(2) - 1)
    def _():
        y = acc_ref[...] + b_ref[...].astype(jnp.float32)
        if activation is not None:
            y = activation(y)
        o_ref[...] = y.astype(o_ref.dtype)


def linear(x, w, b, *, activation=None, transpose_rhs=False):
    """x: (..., K) @ w: (K, N) [or (N, K) if transpose_rhs] + b: (N,) -> (..., N)."""
    lead, K = x.shape[:-1], x.shape[-1]
    x2 = x.reshape(-1, K)
    rows = x2.shape[0]
    N = w.shape[0] if transpose_rhs else w.shape[1]

    tm = _pick_tile(rows, 256, 8)
    tn = _pick_tile(N, 512, 128)
    tk = _pick_tile(K, 512, 128)
    grid = (rows // tm, N // tn, K // tk)

    if transpose_rhs:
        w_spec = pl.BlockSpec((tn, tk), lambda i, j, k: (j, k))
    else:
        w_spec = pl.BlockSpec((tk, tn), lambda i, j, k: (k, j))

    out = pl.pallas_call(
        functools.partial(_linear_kernel, activation=activation,
                          transpose_rhs=transpose_rhs),
        out_shape=jax.ShapeDtypeStruct((rows, N), x.dtype),
        grid=grid,
        in_specs=[pl.BlockSpec((tm, tk), lambda i, j, k: (i, k)),
                  w_spec,
                  pl.BlockSpec((1, tn), lambda i, j, k: (0, j))],
        out_specs=pl.BlockSpec((tm, tn), lambda i, j, k: (i, j)),
        scratch_shapes=[pltpu.VMEM((tm, tn), jnp.float32)],
        compiler_params=pltpu.CompilerParams(
            dimension_semantics=("parallel", "parallel", "arbitrary")),
        cost_estimate=pl.CostEstimate(
            flops=2 * rows * N * K,
            transcendentals=(rows * N if activation is not None else 0),
            bytes_accessed=4 * (rows * K + K * N + rows * N + N)),
    )(x2, w, b.reshape(1, N))
    return out.reshape(*lead, N)


# -----------------------------------------------------------------------------
# fused add + LayerNorm (row-tiled; positional embedding reused via index_map)
# -----------------------------------------------------------------------------
def _add_ln_kernel(x_ref, r_ref, g_ref, b_ref, o_ref, *, eps):
    x = x_ref[...].astype(jnp.float32) + r_ref[...].astype(jnp.float32)
    mean = jnp.mean(x, axis=-1, keepdims=True)
    var = jnp.mean(jnp.square(x - mean), axis=-1, keepdims=True)
    y = (x - mean) * jax.lax.rsqrt(var + eps)
    o_ref[...] = (y * g_ref[...].astype(jnp.float32)
                  + b_ref[...].astype(jnp.float32)).astype(o_ref.dtype)


def add_layernorm(x, res, gamma, beta, eps):
    """LayerNorm(x + res) over the last axis. res batch dim may be 1 (broadcast)."""
    B, S, H = x.shape
    res_b = res.shape[0]
    tS = _pick_tile(S, 1024, 8)

    x_map = lambda b, s: (b, s, 0)
    r_map = (lambda b, s: (0, s, 0)) if res_b == 1 else (lambda b, s: (b, s, 0))
    p_map = lambda b, s: (0, 0, 0)

    return pl.pallas_call(
        functools.partial(_add_ln_kernel, eps=eps),
        out_shape=jax.ShapeDtypeStruct((B, S, H), x.dtype),
        grid=(B, S // tS),
        in_specs=[pl.BlockSpec((1, tS, H), x_map),
                  pl.BlockSpec((1, tS, H), r_map),
                  pl.BlockSpec((1, 1, H), p_map),
                  pl.BlockSpec((1, 1, H), p_map)],
        out_specs=pl.BlockSpec((1, tS, H), x_map),
        compiler_params=pltpu.CompilerParams(
            dimension_semantics=("parallel", "parallel")),
    )(x, res, gamma.reshape(1, 1, H), beta.reshape(1, 1, H))


# -----------------------------------------------------------------------------
# multi-head attention with in-kernel (memory-block + causal) mask
# -----------------------------------------------------------------------------
def _mha_kernel(q_ref, k_ref, v_ref, o_ref, *, scale, num_memory,
                heads_per_block, head_dim):
    S = q_ref.shape[1]
    # additive mask [[0,-inf],[0,causal]] generated from iotas (no HBM mask tensor):
    rows = jax.lax.broadcasted_iota(jnp.int32, (S, S), 0)
    cols = jax.lax.broadcasted_iota(jnp.int32, (S, S), 1)
    allowed = jnp.logical_or(cols < num_memory, cols <= rows)
    bias = jnp.where(allowed, 0.0, float("-inf")).astype(jnp.float32)

    qb = q_ref[0]    # (S, heads_per_block * head_dim)
    kb = k_ref[0]
    vb = v_ref[0]

    for h in range(heads_per_block):
        lo = h * head_dim
        qh = qb[:, lo:lo + head_dim]
        kh = kb[:, lo:lo + head_dim]
        vh = vb[:, lo:lo + head_dim]
        s = jax.lax.dot_general(qh, kh, (((1,), (1,)), ((), ())),
                                preferred_element_type=jnp.float32)
        s = s * scale + bias
        m = jnp.max(s, axis=-1, keepdims=True)
        p = jnp.exp(s - m)
        denom = jnp.sum(p, axis=-1, keepdims=True)
        p = p * pl.reciprocal(denom, approx=False)  # approx=True possible if accuracy allows
        ctx = jnp.dot(p.astype(vh.dtype), vh, preferred_element_type=jnp.float32)
        o_ref[0, :, lo:lo + head_dim] = ctx.astype(o_ref.dtype)


def _heads_per_block(num_heads, head_dim, seq_len, vmem_budget=6 * 1024 * 1024):
    """Largest head group (dividing num_heads, lane-legal) whose working set fits VMEM."""
    best = num_heads
    for hb in range(num_heads, 0, -1):
        if num_heads % hb:
            continue
        if hb != num_heads and (hb * head_dim) % 128:
            continue
        need = 4 * (4 * seq_len * hb * head_dim * 2 + seq_len * seq_len)
        if need <= vmem_budget:
            return hb
        best = hb
    return best


def multi_head_attention(q, k, v, *, num_memory, num_heads):
    """q,k,v: (B, S, H) -> (B, S, H); heads sliced via BlockSpec (no transposes)."""
    B, S, H = q.shape
    dh = H // num_heads
    hb = _heads_per_block(num_heads, dh, S)
    n_hblk = num_heads // hb
    scale = 1.0 / math.sqrt(dh)

    spec = pl.BlockSpec((1, S, hb * dh), lambda b, h: (b, 0, h))
    return pl.pallas_call(
        functools.partial(_mha_kernel, scale=scale, num_memory=num_memory,
                          heads_per_block=hb, head_dim=dh),
        out_shape=jax.ShapeDtypeStruct((B, S, H), q.dtype),
        grid=(B, n_hblk),
        in_specs=[spec, spec, spec],
        out_specs=spec,
        compiler_params=pltpu.CompilerParams(
            dimension_semantics=("parallel", "parallel")),
    )(q, k, v)


# -----------------------------------------------------------------------------
# model (plain-JAX glue around the Pallas kernels)
# -----------------------------------------------------------------------------
def init_params(key, cfg):
    H, FF, V = cfg["hidden_size"], cfg["feedforward_size"], cfg["vocab_size"]
    AV, L = cfg["av_feature_size"], cfg["num_layers"]
    keys = jax.random.split(key, 3 + L)

    def nrm(k, shape):
        return 0.02 * jax.random.normal(k, shape, jnp.float32)  # BERT N(0, 0.02)

    params = {
        "av_w": nrm(keys[0], (AV, H)),
        "av_b": jnp.zeros((H,), jnp.float32),
        "word_emb": nrm(keys[1], (V, H)),
        "pos_emb": nrm(keys[2], (cfg["max_caption_length"], H)),
        "emb_ln_g": jnp.ones((H,), jnp.float32),
        "emb_ln_b": jnp.zeros((H,), jnp.float32),
        "out_b": jnp.zeros((V,), jnp.float32),   # output.weight is tied to word_emb
        "layers": [],
    }
    for li in range(L):
        lk = jax.random.split(keys[3 + li], 4)
        params["layers"].append({
            # Q/K/V projections fused into a single (H, 3H) weight (mathematically identical
            # to three separate Linears).
            "wqkv": nrm(lk[0], (H, 3 * H)), "bqkv": jnp.zeros((3 * H,), jnp.float32),
            "wo": nrm(lk[1], (H, H)), "bo": jnp.zeros((H,), jnp.float32),
            "ln1_g": jnp.ones((H,), jnp.float32), "ln1_b": jnp.zeros((H,), jnp.float32),
            "w1": nrm(lk[2], (H, FF)), "b1": jnp.zeros((FF,), jnp.float32),
            "w2": nrm(lk[3], (FF, H)), "b2": jnp.zeros((H,), jnp.float32),
            "ln2_g": jnp.ones((H,), jnp.float32), "ln2_b": jnp.zeros((H,), jnp.float32),
        })
    return params


def transformer_decoder_textual_head(params, hidden_states, caption_tokens, cfg,
                                     fuse_gelu=True):
    """hidden_states: (B, M, av_feature_size) f32; caption_tokens: (B, T) int32.
    Returns output_logits: (B, T, vocab_size)."""
    B, M, _ = hidden_states.shape
    _, T = caption_tokens.shape
    H, nH = cfg["hidden_size"], cfg["attention_heads"]

    gelu_act = _exact_gelu if fuse_gelu else None

    # av_projection (nn.Linear)
    memory = linear(hidden_states, params["av_w"], params["av_b"])           # (B,M,H)

    # WordAndPositionalEmbedding: LayerNorm(word + pos), eps=1e-8 (dropout = id)
    # TODO(synk): the token-embedding gather stays in plain JAX (no clean Pallas gain).
    word = jnp.take(params["word_emb"], caption_tokens, axis=0)              # (B,T,H)
    pos = params["pos_emb"][:T][None, :, :]                                  # (1,T,H)
    captions = add_layernorm(word, pos, params["emb_ln_g"],
                             params["emb_ln_b"], eps=1e-8)                   # (B,T,H)

    x = jnp.concatenate([memory, captions], axis=1)                          # (B,S,H)

    # BertEncoder, post-norm, LayerNorm eps=1e-12, dropout = identity
    for layer in params["layers"]:
        qkv = linear(x, layer["wqkv"], layer["bqkv"])                        # (B,S,3H)
        q = qkv[..., :H]
        k = qkv[..., H:2 * H]
        v = qkv[..., 2 * H:]
        ctx = multi_head_attention(q, k, v, num_memory=M, num_heads=nH)      # (B,S,H)
        attn_out = linear(ctx, layer["wo"], layer["bo"])
        x = add_layernorm(attn_out, x, layer["ln1_g"], layer["ln1_b"], eps=1e-12)

        h1 = linear(x, layer["w1"], layer["b1"], activation=gelu_act)
        if gelu_act is None:
            # TODO(synk): erf not lowerable in Mosaic on this jax; exact GELU in plain JAX.
            h1 = _exact_gelu(h1)
        h2 = linear(h1, layer["w2"], layer["b2"])
        x = add_layernorm(h2, x, layer["ln2_g"], layer["ln2_b"], eps=1e-12)

    textual_features = x[:, M:, :]                                           # (B,T,H)
    # output Linear tied to word embedding: logits = x @ word_emb^T + b (no .T materialized)
    logits = linear(textual_features, params["word_emb"], params["out_b"],
                    transpose_rhs=True)
    return logits


if __name__ == "__main__":
    cfg = dict(
        av_feature_size=48,
        vocab_size=96,
        hidden_size=32,
        num_layers=2,
        attention_heads=4,
        feedforward_size=64,
        max_caption_length=16,
    )
    root = jax.random.PRNGKey(0)
    k_params, k_av, k_tok = jax.random.split(root, 3)
    params = init_params(k_params, cfg)

    B, M, T = 2, 4, 8
    hidden_states = jax.random.normal(k_av, (B, M, cfg["av_feature_size"]), jnp.float32)
    caption_tokens = jax.random.randint(k_tok, (B, T), 0, cfg["vocab_size"],
                                        dtype=jnp.int32)

    fuse_gelu = _probe_gelu_in_mosaic()

    fwd = jax.jit(lambda p, hs, ct: transformer_decoder_textual_head(
        p, hs, ct, cfg, fuse_gelu=fuse_gelu))
    logits = fwd(params, hidden_states, caption_tokens)
    jax.block_until_ready(logits)

    assert logits.shape == (B, T, cfg["vocab_size"]), logits.shape
    assert bool(jnp.all(jnp.isfinite(logits)))
    print("KERNEL_OK")
</pallas_src>

<mosaic_0001>
module attributes {stable_mosaic.version = 11 : i64} {
  func.func @_linear_kernel(%arg0: i32, %arg1: i32, %arg2: i32, %arg3: memref<8x48xf32, #tpu.memory_space<vmem>>, %arg4: memref<48x32xf32, #tpu.memory_space<vmem>>, %arg5: memref<1x32xf32, #tpu.memory_space<vmem>>, %arg6: memref<8x32xf32, #tpu.memory_space<vmem>>, %arg7: memref<8x32xf32, #tpu.memory_space<vmem>>) attributes {dimension_semantics = [#tpu.dimension_semantics<parallel>, #tpu.dimension_semantics<parallel>, #tpu.dimension_semantics<arbitrary>], iteration_bounds = array<i64: 1, 1, 1>, scalar_prefetch = 0 : i64, scratch_operands = 1 : i64, tpu.core_type = #tpu.core_type<tc>, window_params = [{transform_indices = @transform_0, window_bounds = array<i64: 8, 48>}, {transform_indices = @transform_1, window_bounds = array<i64: 48, 32>}, {transform_indices = @transform_2, window_bounds = array<i64: 1, 32>}, {transform_indices = @transform_3, window_bounds = array<i64: 8, 32>}]} {
    %c0_i32 = arith.constant 0 : i32
    %0 = arith.cmpi eq, %arg2, %c0_i32 : i32
    %1 = arith.extui %0 : i1 to i32
    %c0_i32_0 = arith.constant 0 : i32
    %2 = arith.cmpi ne, %1, %c0_i32_0 : i32
    scf.if %2 {
      %cst_10 = arith.constant 0.000000e+00 : f32
      %12 = vector.broadcast %cst_10 : f32 to vector<8x32xf32>
      %c0_11 = arith.constant 0 : index
      %c0_12 = arith.constant 0 : index
      %13 = vector.load %arg7[%c0_11, %c0_12] : memref<8x32xf32, #tpu.memory_space<vmem>>, vector<8x32xf32>
      tpu.vector_store %arg7[%c0_11, %c0_12], %12 {strides = array<i32>} : memref<8x32xf32, #tpu.memory_space<vmem>>, vector<8x32xf32>,
    } else {
    }
    %c0 = arith.constant 0 : index
    %c0_1 = arith.constant 0 : index
    %3 = vector.load %arg7[%c0, %c0_1] : memref<8x32xf32, #tpu.memory_space<vmem>>, vector<8x32xf32>
    %c0_2 = arith.constant 0 : index
    %c0_3 = arith.constant 0 : index
    %4 = vector.load %arg3[%c0_2, %c0_3] : memref<8x48xf32, #tpu.memory_space<vmem>>, vector<8x48xf32>
    %c0_4 = arith.constant 0 : index
    %c0_5 = arith.constant 0 : index
    %5 = vector.load %arg4[%c0_4, %c0_5] : memref<48x32xf32, #tpu.memory_space<vmem>>, vector<48x32xf32>
    %cst = arith.constant dense<0.000000e+00> : vector<8x32xf32>
    %6 = tpu.matmul %4, %5, %cst {dimension_numbers = #tpu.dot_dimension_numbers<[1], [0], [0], [1], [0, 0, 1, 1], [], []>} : vector<8x48xf32>, vector<48x32xf32>, vector<8x32xf32> -> vector<8x32xf32>
    %7 = arith.addf %3, %6 : vector<8x32xf32>
    %c0_6 = arith.constant 0 : index
    %c0_7 = arith.constant 0 : index
    %8 = vector.load %arg7[%c0_6, %c0_7] : memref<8x32xf32, #tpu.memory_space<vmem>>, vector<8x32xf32>
    tpu.vector_store %arg7[%c0_6, %c0_7], %7 {strides = array<i32>} : memref<8x32xf32, #tpu.memory_space<vmem>>, vector<8x32xf32>,
    %c0_i32_8 = arith.constant 0 : i32
    %9 = arith.cmpi eq, %arg2, %c0_i32_8 : i32
    %10 = arith.extui %9 : i1 to i32
    %c0_i32_9 = arith.constant 0 : i32
    %11 = arith.cmpi ne, %10, %c0_i32_9 : i32
    scf.if %11 {
      %c0_10 = arith.constant 0 : index
      %c0_11 = arith.constant 0 : index
      %12 = vector.load %arg7[%c0_10, %c0_11] : memref<8x32xf32, #tpu.memory_space<vmem>>, vector<8x32xf32>
      %c0_12 = arith.constant 0 : index
      %c0_13 = arith.constant 0 : index
      %13 = vector.load %arg5[%c0_12, %c0_13] : memref<1x32xf32, #tpu.memory_space<vmem>>, vector<1x32xf32>
      %14 = vector.broadcast %13 : vector<1x32xf32> to vector<8x32xf32>
      %15 = arith.addf %12, %14 : vector<8x32xf32>
      %c0_14 = arith.constant 0 : index
      %c0_15 = arith.constant 0 : index
      %16 = vector.load %arg6[%c0_14, %c0_15] : memref<8x32xf32, #tpu.memory_space<vmem>>, vector<8x32xf32>
      tpu.vector_store %arg6[%c0_14, %c0_15], %15 {strides = array<i32>} : memref<8x32xf32, #tpu.memory_space<vmem>>, vector<8x32xf32>,
    } else {
    }
    return
  }
  func.func @transform_0(%arg0: i32, %arg1: i32, %arg2: i32) -> (i32, i32) {
    %c0_i32 = arith.constant 0 : i32
    return %arg0, %arg2 : i32, i32
  }
  func.func @transform_1(%arg0: i32, %arg1: i32, %arg2: i32) -> (i32, i32) {
    %c0_i32 = arith.constant 0 : i32
    return %arg2, %arg1 : i32, i32
  }
  func.func @transform_2(%arg0: i32, %arg1: i32, %arg2: i32) -> (i32, i32) {
    %c0_i32 = arith.constant 0 : i32
    %c0_i32_0 = arith.constant 0 : i32
    return %c0_i32, %arg1 : i32, i32
  }
  func.func @transform_3(%arg0: i32, %arg1: i32, %arg2: i32) -> (i32, i32) {
    %c0_i32 = arith.constant 0 : i32
    return %arg0, %arg1 : i32, i32
  }
}

module attributes {stable_mosaic.version = 11 : i64} {
  func.func @_linear_kernel(%arg0: i32, %arg1: i32, %arg2: i32, %arg3: memref<24x32xf32, #tpu.memory_space<vmem>>, %arg4: memref<32x96xf32, #tpu.memory_space<vmem>>, %arg5: memref<1x96xf32, #tpu.memory_space<vmem>>, %arg6: memref<24x96xf32, #tpu.memory_space<vmem>>, %arg7: memref<24x96xf32, #tpu.memory_space<vmem>>) attributes {dimension_semantics = [#tpu.dimension_semantics<parallel>, #tpu.dimension_semantics<parallel>, #tpu.dimension_semantics<arbitrary>], iteration_bounds = array<i64: 1, 1, 1>, scalar_prefetch = 0 : i64, scratch_operands = 1 : i64, tpu.core_type = #tpu.core_type<tc>, window_params = [{transform_indices = @transform_0, window_bounds = array<i64: 24, 32>}, {transform_indices = @transform_1, window_bounds = array<i64: 32, 96>}, {transform_indices = @transform_2, window_bounds = array<i64: 1, 96>}, {transform_indices = @transform_3, window_bounds = array<i64: 24, 96>}]} {
    %c0_i32 = arith.constant 0 : i32
    %0 = arith.cmpi eq, %arg2, %c0_i32 : i32
    %1 = arith.extui %0 : i1 to i32
    %c0_i32_0 = arith.constant 0 : i32
    %2 = arith.cmpi ne, %1, %c0_i32_0 : i32
    scf.if %2 {
      %cst_10 = arith.constant 0.000000e+00 : f32
      %12 = vector.broadcast %cst_10 : f32 to vector<24x96xf32>
      %c0_11 = arith.constant 0 : index
      %c0_12 = arith.constant 0 : index
      %13 = vector.load %arg7[%c0_11, %c0_12] : memref<24x96xf32, #tpu.memory_space<vmem>>, vector<24x96xf32>
      tpu.vector_store %arg7[%c0_11, %c0_12], %12 {strides = array<i32>} : memref<24x96xf32, #tpu.memory_space<vmem>>, vector<24x96xf32>,
    } else {
    }
    %c0 = arith.constant 0 : index
    %c0_1 = arith.constant 0 : index
    %3 = vector.load %arg7[%c0, %c0_1] : memref<24x96xf32, #tpu.memory_space<vmem>>, vector<24x96xf32>
    %c0_2 = arith.constant 0 : index
    %c0_3 = arith.constant 0 : index
    %4 = vector.load %arg3[%c0_2, %c0_3] : memref<24x32xf32, #tpu.memory_space<vmem>>, vector<24x32xf32>
    %c0_4 = arith.constant 0 : index
    %c0_5 = arith.constant 0 : index
    %5 = vector.load %arg4[%c0_4, %c0_5] : memref<32x96xf32, #tpu.memory_space<vmem>>, vector<32x96xf32>
    %cst = arith.constant dense<0.000000e+00> : vector<24x96xf32>
    %6 = tpu.matmul %4, %5, %cst {dimension_numbers = #tpu.dot_dimension_numbers<[1], [0], [0], [1], [0, 0, 1, 1], [], []>} : vector<24x32xf32>, vector<32x96xf32>, vector<24x96xf32> -> vector<24x96xf32>
    %7 = arith.addf %3, %6 : vector<24x96xf32>
    %c0_6 = arith.constant 0 : index
    %c0_7 = arith.constant 0 : index
    %8 = vector.load %arg7[%c0_6, %c0_7] : memref<24x96xf32, #tpu.memory_space<vmem>>, vector<24x96xf32>
    tpu.vector_store %arg7[%c0_6, %c0_7], %7 {strides = array<i32>} : memref<24x96xf32, #tpu.memory_space<vmem>>, vector<24x96xf32>,
    %c0_i32_8 = arith.constant 0 : i32
    %9 = arith.cmpi eq, %arg2, %c0_i32_8 : i32
    %10 = arith.extui %9 : i1 to i32
    %c0_i32_9 = arith.constant 0 : i32
    %11 = arith.cmpi ne, %10, %c0_i32_9 : i32
    scf.if %11 {
      %c0_10 = arith.constant 0 : index
      %c0_11 = arith.constant 0 : index
      %12 = vector.load %arg7[%c0_10, %c0_11] : memref<24x96xf32, #tpu.memory_space<vmem>>, vector<24x96xf32>
      %c0_12 = arith.constant 0 : index
      %c0_13 = arith.constant 0 : index
      %13 = vector.load %arg5[%c0_12, %c0_13] : memref<1x96xf32, #tpu.memory_space<vmem>>, vector<1x96xf32>
      %14 = vector.broadcast %13 : vector<1x96xf32> to vector<24x96xf32>
      %15 = arith.addf %12, %14 : vector<24x96xf32>
      %c0_14 = arith.constant 0 : index
      %c0_15 = arith.constant 0 : index
      %16 = vector.load %arg6[%c0_14, %c0_15] : memref<24x96xf32, #tpu.memory_space<vmem>>, vector<24x96xf32>
      tpu.vector_store %arg6[%c0_14, %c0_15], %15 {strides = array<i32>} : memref<24x96xf32, #tpu.memory_space<vmem>>, vector<24x96xf32>,
    } else {
    }
    return
  }
  func.func @transform_0(%arg0: i32, %arg1: i32, %arg2: i32) -> (i32, i32) {
    %c0_i32 = arith.constant 0 : i32
    return %arg0, %arg2 : i32, i32
  }
  func.func @transform_1(%arg0: i32, %arg1: i32, %arg2: i32) -> (i32, i32) {
    %c0_i32 = arith.constant 0 : i32
    return %arg2, %arg1 : i32, i32
  }
  func.func @transform_2(%arg0: i32, %arg1: i32, %arg2: i32) -> (i32, i32) {
    %c0_i32 = arith.constant 0 : i32
    %c0_i32_0 = arith.constant 0 : i32
    return %c0_i32, %arg1 : i32, i32
  }
  func.func @transform_3(%arg0: i32, %arg1: i32, %arg2: i32) -> (i32, i32) {
    %c0_i32 = arith.constant 0 : i32
    return %arg0, %arg1 : i32, i32
  }
}

module attributes {stable_mosaic.version = 11 : i64} {
  func.func @_add_ln_kernel(%arg0: i32, %arg1: i32, %arg2: memref<1x8x32xf32, #tpu.memory_space<vmem>>, %arg3: memref<1x8x32xf32, #tpu.memory_space<vmem>>, %arg4: memref<1x1x32xf32, #tpu.memory_space<vmem>>, %arg5: memref<1x1x32xf32, #tpu.memory_space<vmem>>, %arg6: memref<1x8x32xf32, #tpu.memory_space<vmem>>) attributes {dimension_semantics = [#tpu.dimension_semantics<parallel>, #tpu.dimension_semantics<parallel>], iteration_bounds = array<i64: 2, 1>, scalar_prefetch = 0 : i64, scratch_operands = 0 : i64, tpu.core_type = #tpu.core_type<tc>, window_params = [{transform_indices = @transform_0, window_bounds = array<i64: 1, 8, 32>}, {transform_indices = @transform_1, window_bounds = array<i64: 1, 8, 32>}, {pipeline_mode = #tpu.pipeline_mode<synchronous>, transform_indices = @transform_2, window_bounds = array<i64: 1, 1, 32>}, {pipeline_mode = #tpu.pipeline_mode<synchronous>, transform_indices = @transform_3, window_bounds = array<i64: 1, 1, 32>}, {transform_indices = @transform_4, window_bounds = array<i64: 1, 8, 32>}]} {
    %c0 = arith.constant 0 : index
    %c0_0 = arith.constant 0 : index
    %c0_1 = arith.constant 0 : index
    %0 = vector.load %arg2[%c0, %c0_0, %c0_1] : memref<1x8x32xf32, #tpu.memory_space<vmem>>, vector<1x8x32xf32>
    %c0_2 = arith.constant 0 : index
    %c0_3 = arith.constant 0 : index
    %c0_4 = arith.constant 0 : index
    %1 = vector.load %arg3[%c0_2, %c0_3, %c0_4] : memref<1x8x32xf32, #tpu.memory_space<vmem>>, vector<1x8x32xf32>
    %2 = arith.addf %0, %1 : vector<1x8x32xf32>
    %cst = arith.constant dense<0.000000e+00> : vector<1x8xf32>
    %3 = vector.multi_reduction <add>, %2, %cst [2] : vector<1x8x32xf32> to vector<1x8xf32>
    %4 = vector.shape_cast %3 : vector<1x8xf32> to vector<1x8x1xf32>
    %cst_5 = arith.constant 3.200000e+01 : f32
    %5 = vector.broadcast %cst_5 : f32 to vector<1x8x1xf32>
    %6 = arith.divf %4, %5 : vector<1x8x1xf32>
    %7 = vector.broadcast %6 : vector<1x8x1xf32> to vector<1x8x32xf32>
    %8 = arith.subf %2, %7 : vector<1x8x32xf32>
    %9 = arith.mulf %8, %8 : vector<1x8x32xf32>
    %cst_6 = arith.constant dense<0.000000e+00> : vector<1x8xf32>
    %10 = vector.multi_reduction <add>, %9, %cst_6 [2] : vector<1x8x32xf32> to vector<1x8xf32>
    %11 = vector.shape_cast %10 : vector<1x8xf32> to vector<1x8x1xf32>
    %cst_7 = arith.constant 3.200000e+01 : f32
    %12 = vector.broadcast %cst_7 : f32 to vector<1x8x1xf32>
    %13 = arith.divf %11, %12 : vector<1x8x1xf32>
    %14 = vector.broadcast %6 : vector<1x8x1xf32> to vector<1x8x32xf32>
    %15 = arith.subf %2, %14 : vector<1x8x32xf32>
    %cst_8 = arith.constant 9.99999993E-9 : f32
    %16 = vector.broadcast %cst_8 : f32 to vector<1x8x1xf32>
    %17 = arith.addf %13, %16 : vector<1x8x1xf32>
    %18 = math.rsqrt %17 : vector<1x8x1xf32>
    %19 = vector.broadcast %18 : vector<1x8x1xf32> to vector<1x8x32xf32>
    %20 = arith.mulf %15, %19 : vector<1x8x32xf32>
    %c0_9 = arith.constant 0 : index
    %c0_10 = arith.constant 0 : index
    %c0_11 = arith.constant 0 : index
    %21 = vector.load %arg4[%c0_9, %c0_10, %c0_11] : memref<1x1x32xf32, #tpu.memory_space<vmem>>, vector<1x1x32xf32>
    %22 = vector.broadcast %21 : vector<1x1x32xf32> to vector<1x8x32xf32>
    %23 = arith.mulf %20, %22 : vector<1x8x32xf32>
    %c0_12 = arith.constant 0 : index
    %c0_13 = arith.constant 0 : index
    %c0_14 = arith.constant 0 : index
    %24 = vector.load %arg5[%c0_12, %c0_13, %c0_14] : memref<1x1x32xf32, #tpu.memory_space<vmem>>, vector<1x1x32xf32>
    %25 = vector.broadcast %24 : vector<1x1x32xf32> to vector<1x8x32xf32>
    %26 = arith.addf %23, %25 : vector<1x8x32xf32>
    %c0_15 = arith.constant 0 : index
    %c0_16 = arith.constant 0 : index
    %c0_17 = arith.constant 0 : index
    %27 = vector.load %arg6[%c0_15, %c0_16, %c0_17] : memref<1x8x32xf32, #tpu.memory_space<vmem>>, vector<1x8x32xf32>
    tpu.vector_store %arg6[%c0_15, %c0_16, %c0_17], %26 {strides = array<i32>} : memref<1x8x32xf32, #tpu.memory_space<vmem>>, vector<1x8x32xf32>,
    return
  }
  func.func @transform_0(%arg0: i32, %arg1: i32) -> (i32, i32, i32) {
    %c0_i32 = arith.constant 0 : i32
    %c0_i32_0 = arith.constant 0 : i32
    return %arg0, %arg1, %c0_i32 : i32, i32, i32
  }
  func.func @transform_1(%arg0: i32, %arg1: i32) -> (i32, i32, i32) {
    %c0_i32 = arith.constant 0 : i32
    %c0_i32_0 = arith.constant 0 : i32
    %c0_i32_1 = arith.constant 0 : i32
    return %c0_i32, %arg1, %c0_i32_0 : i32, i32, i32
  }
  func.func @transform_2(%arg0: i32, %arg1: i32) -> (i32, i32, i32) {
    %c0_i32 = arith.constant 0 : i32
    %c0_i32_0 = arith.constant 0 : i32
    %c0_i32_1 = arith.constant 0 : i32
    %c0_i32_2 = arith.constant 0 : i32
    return %c0_i32, %c0_i32_0, %c0_i32_1 : i32, i32, i32
  }
  func.func @transform_3(%arg0: i32, %arg1: i32) -> (i32, i32, i32) {
    %c0_i32 = arith.constant 0 : i32
    %c0_i32_0 = arith.constant 0 : i32
    %c0_i32_1 = arith.constant 0 : i32
    %c0_i32_2 = arith.constant 0 : i32
    return %c0_i32, %c0_i32_0, %c0_i32_1 : i32, i32, i32
  }
  func.func @transform_4(%arg0: i32, %arg1: i32) -> (i32, i32, i32) {
    %c0_i32 = arith.constant 0 : i32
    %c0_i32_0 = arith.constant 0 : i32
    return %arg0, %arg1, %c0_i32 : i32, i32, i32
  }
}

module attributes {stable_mosaic.version = 11 : i64} {
  func.func @_mha_kernel(%arg0: i32, %arg1: i32, %arg2: memref<1x12x32xf32, #tpu.memory_space<vmem>>, %arg3: memref<1x12x32xf32, #tpu.memory_space<vmem>>, %arg4: memref<1x12x32xf32, #tpu.memory_space<vmem>>, %arg5: memref<1x12x32xf32, #tpu.memory_space<vmem>>) attributes {dimension_semantics = [#tpu.dimension_semantics<parallel>, #tpu.dimension_semantics<parallel>], iteration_bounds = array<i64: 2, 1>, scalar_prefetch = 0 : i64, scratch_operands = 0 : i64, tpu.core_type = #tpu.core_type<tc>, window_params = [{transform_indices = @transform_0, window_bounds = array<i64: 1, 12, 32>}, {transform_indices = @transform_1, window_bounds = array<i64: 1, 12, 32>}, {transform_indices = @transform_2, window_bounds = array<i64: 1, 12, 32>}, {transform_indices = @transform_3, window_bounds = array<i64: 1, 12, 32>}]} {
    %0 = tpu.iota {dimensions = array<i32: 0>} : vector<12x12xi32>
    %1 = tpu.iota {dimensions = array<i32: 1>} : vector<12x12xi32>
    %c4_i32 = arith.constant 4 : i32
    %2 = vector.broadcast %c4_i32 : i32 to vector<12x12xi32>
    %3 = arith.cmpi slt, %1, %2 : vector<12x12xi32>
    %4 = arith.cmpi sle, %1, %0 : vector<12x12xi32>
    %5 = arith.ori %3, %4 : vector<12x12xi1>
    %cst = arith.constant 0.000000e+00 : f32
    %cst_0 = arith.constant 0xFF800000 : f32
    %6 = vector.broadcast %cst : f32 to vector<12x12xf32>
    %7 = vector.broadcast %cst_0 : f32 to vector<12x12xf32>
    %8 = arith.select %5, %6, %7 : vector<12x12xi1>, vector<12x12xf32>
    %c0 = arith.constant 0 : index
    %c0_1 = arith.constant 0 : index
    %c0_2 = arith.constant 0 : index
    %9 = vector.load %arg2[%c0, %c0_1, %c0_2] : memref<1x12x32xf32, #tpu.memory_space<vmem>>, vector<1x12x32xf32>
    %10 = vector.shape_cast %9 : vector<1x12x32xf32> to vector<12x32xf32>
    %c0_3 = arith.constant 0 : index
    %c0_4 = arith.constant 0 : index
    %c0_5 = arith.constant 0 : index
    %11 = vector.load %arg3[%c0_3, %c0_4, %c0_5] : memref<1x12x32xf32, #tpu.memory_space<vmem>>, vector<1x12x32xf32>
    %12 = vector.shape_cast %11 : vector<1x12x32xf32> to vector<12x32xf32>
    %c0_6 = arith.constant 0 : index
    %c0_7 = arith.constant 0 : index
    %c0_8 = arith.constant 0 : index
    %13 = vector.load %arg4[%c0_6, %c0_7, %c0_8] : memref<1x12x32xf32, #tpu.memory_space<vmem>>, vector<1x12x32xf32>
    %14 = vector.shape_cast %13 : vector<1x12x32xf32> to vector<12x32xf32>
    %15 = vector.extract_strided_slice %10 {offsets = [0, 0], sizes = [12, 8], strides = [1, 1]} : vector<12x32xf32> to vector<12x8xf32>
    %16 = vector.extract_strided_slice %12 {offsets = [0, 0], sizes = [12, 8], strides = [1, 1]} : vector<12x32xf32> to vector<12x8xf32>
    %17 = vector.extract_strided_slice %14 {offsets = [0, 0], sizes = [12, 8], strides = [1, 1]} : vector<12x32xf32> to vector<12x8xf32>
    %cst_9 = arith.constant dense<0.000000e+00> : vector<12x12xf32>
    %18 = tpu.matmul %15, %16, %cst_9 {dimension_numbers = #tpu.dot_dimension_numbers<[1], [1], [0], [0], [0, 0, 1, 0], [], []>} : vector<12x8xf32>, vector<12x8xf32>, vector<12x12xf32> -> vector<12x12xf32>
    %cst_10 = arith.constant 0.353553385 : f32
    %19 = vector.broadcast %cst_10 : f32 to vector<12x12xf32>
    %20 = arith.mulf %18, %19 : vector<12x12xf32>
    %21 = arith.addf %20, %8 : vector<12x12xf32>
    %cst_11 = arith.constant dense<0xFF800000> : vector<12xf32>
    %22 = vector.multi_reduction <maximumf>, %21, %cst_11 [1] : vector<12x12xf32> to vector<12xf32>
    %23 = vector.shape_cast %22 : vector<12xf32> to vector<12x1xf32>
    %24 = vector.broadcast %23 : vector<12x1xf32> to vector<12x12xf32>
    %25 = arith.subf %21, %24 : vector<12x12xf32>
    %26 = math.exp %25 : vector<12x12xf32>
    %cst_12 = arith.constant dense<0.000000e+00> : vector<12xf32>
    %27 = vector.multi_reduction <add>, %26, %cst_12 [1] : vector<12x12xf32> to vector<12xf32>
    %28 = vector.shape_cast %27 : vector<12xf32> to vector<12x1xf32>
    %29 = tpu.reciprocal %28 : vector<12x1xf32> -> vector<12x1xf32>
    %30 = vector.broadcast %29 : vector<12x1xf32> to vector<12x12xf32>
    %31 = arith.mulf %26, %30 : vector<12x12xf32>
    %cst_13 = arith.constant dense<0.000000e+00> : vector<12x8xf32>
    %32 = tpu.matmul %31, %17, %cst_13 {dimension_numbers = #tpu.dot_dimension_numbers<[1], [0], [0], [1], [0, 0, 1, 1], [], []>} : vector<12x12xf32>, vector<12x8xf32>, vector<12x8xf32> -> vector<12x8xf32>
    %c0_14 = arith.constant 0 : index
    %c0_15 = arith.constant 0 : index
    %c0_16 = arith.constant 0 : index
    %33 = vector.load %arg5[%c0_14, %c0_15, %c0_16] : memref<1x12x32xf32, #tpu.memory_space<vmem>>, vector<1x12x8xf32>
    %34 = vector.shape_cast %33 : vector<1x12x8xf32> to vector<12x8xf32>
    %35 = vector.shape_cast %32 : vector<12x8xf32> to vector<1x12x8xf32>
    tpu.vector_store %arg5[%c0_14, %c0_15, %c0_16], %35 {strides = array<i32>} : memref<1x12x32xf32, #tpu.memory_space<vmem>>, vector<1x12x8xf32>,
    %36 = vector.extract_strided_slice %10 {offsets = [0, 8], sizes = [12, 8], strides = [1, 1]} : vector<12x32xf32> to vector<12x8xf32>
    %37 = vector.extract_strided_slice %12 {offsets = [0, 8], sizes = [12, 8], strides = [1, 1]} : vector<12x32xf32> to vector<12x8xf32>
    %38 = vector.extract_strided_slice %14 {offsets = [0, 8], sizes = [12, 8], strides = [1, 1]} : vector<12x32xf32> to vector<12x8xf32>
    %cst_17 = arith.constant dense<0.000000e+00> : vector<12x12xf32>
    %39 = tpu.matmul %36, %37, %cst_17 {dimension_numbers = #tpu.dot_dimension_numbers<[1], [1], [0], [0], [0, 0, 1, 0], [], []>} : vector<12x8xf32>, vector<12x8xf32>, vector<12x12xf32> -> vector<12x12xf32>
    %cst_18 = arith.constant 0.353553385 : f32
    %40 = vector.broadcast %cst_18 : f32 to vector<12x12xf32>
    %41 = arith.mulf %39, %40 : vector<12x12xf32>
    %42 = arith.addf %41, %8 : vector<12x12xf32>
    %cst_19 = arith.constant dense<0xFF800000> : vector<12xf32>
    %43 = vector.multi_reduction <maximumf>, %42, %cst_19 [1] : vector<12x12xf32> to vector<12xf32>
    %44 = vector.shape_cast %43 : vector<12xf32> to vector<12x1xf32>
    %45 = vector.broadcast %44 : vector<12x1xf32> to vector<12x12xf32>
    %46 = arith.subf %42, %45 : vector<12x12xf32>
    %47 = math.exp %46 : vector<12x12xf32>
    %cst_20 = arith.constant dense<0.000000e+00> : vector<12xf32>
    %48 = vector.multi_reduction <add>, %47, %cst_20 [1] : vector<12x12xf32> to vector<12xf32>
    %49 = vector.shape_cast %48 : vector<12xf32> to vector<12x1xf32>
    %50 = tpu.reciprocal %49 : vector<12x1xf32> -> vector<12x1xf32>
    %51 = vector.broadcast %50 : vector<12x1xf32> to vector<12x12xf32>
    %52 = arith.mulf %47, %51 : vector<12x12xf32>
    %cst_21 = arith.constant dense<0.000000e+00> : vector<12x8xf32>
    %53 = tpu.matmul %52, %38, %cst_21 {dimension_numbers = #tpu.dot_dimension_numbers<[1], [0], [0], [1], [0, 0, 1, 1], [], []>} : vector<12x12xf32>, vector<12x8xf32>, vector<12x8xf32> -> vector<12x8xf32>
    %c0_22 = arith.constant 0 : index
    %c0_23 = arith.constant 0 : index
    %c8 = arith.constant 8 : index
    %54 = vector.load %arg5[%c0_22, %c0_23, %c8] : memref<1x12x32xf32, #tpu.memory_space<vmem>>, vector<1x12x8xf32>
    %55 = vector.shape_cast %54 : vector<1x12x8xf32> to vector<12x8xf32>
    %56 = vector.shape_cast %53 : vector<12x8xf32> to vector<1x12x8xf32>
    tpu.vector_store %arg5[%c0_22, %c0_23, %c8], %56 {strides = array<i32>} : memref<1x12x32xf32, #tpu.memory_space<vmem>>, vector<1x12x8xf32>,
    %57 = vector.extract_strided_slice %10 {offsets = [0, 16], sizes = [12, 8], strides = [1, 1]} : vector<12x32xf32> to vector<12x8xf32>
    %58 = vector.extract_strided_slice %12 {offsets = [0, 16], sizes = [12, 8], strides = [1, 1]} : vector<12x32xf32> to vector<12x8xf32>
    %59 = vector.extract_strided_slice %14 {offsets = [0, 16], sizes = [12, 8], strides = [1, 1]} : vector<12x32xf32> to vector<12x8xf32>
    %cst_24 = arith.constant dense<0.000000e+00> : vector<12x12xf32>
    %60 = tpu.matmul %57, %58, %cst_24 {dimension_numbers = #tpu.dot_dimension_numbers<[1], [1], [0], [0], [0, 0, 1, 0], [], []>} : vector<12x8xf32>, vector<12x8xf32>, vector<12x12xf32> -> vector<12x12xf32>
    %cst_25 = arith.constant 0.353553385 : f32
    %61 = vector.broadcast %cst_25 : f32 to vector<12x12xf32>
    %62 = arith.mulf %60, %61 : vector<12x12xf32>
    %63 = arith.addf %62, %8 : vector<12x12xf32>
    %cst_26 = arith.constant dense<0xFF800000> : vector<12xf32>
    %64 = vector.multi_reduction <maximumf>, %63, %cst_26 [1] : vector<12x12xf32> to vector<12xf32>
    %65 = vector.shape_cast %64 : vector<12xf32> to vector<12x1xf32>
    %66 = vector.broadcast %65 : vector<12x1xf32> to vector<12x12xf32>
    %67 = arith.subf %63, %66 : vector<12x12xf32>
    %68 = math.exp %67 : vector<12x12xf32>
    %cst_27 = arith.constant dense<0.000000e+00> : vector<12xf32>
    %69 = vector.multi_reduction <add>, %68, %cst_27 [1] : vector<12x12xf32> to vector<12xf32>
    %70 = vector.shape_cast %69 : vector<12xf32> to vector<12x1xf32>
    %71 = tpu.reciprocal %70 : vector<12x1xf32> -> vector<12x1xf32>
    %72 = vector.broadcast %71 : vector<12x1xf32> to vector<12x12xf32>
    %73 = arith.mulf %68, %72 : vector<12x12xf32>
    %cst_28 = arith.constant dense<0.000000e+00> : vector<12x8xf32>
    %74 = tpu.matmul %73, %59, %cst_28 {dimension_numbers = #tpu.dot_dimension_numbers<[1], [0], [0], [1], [0, 0, 1, 1], [], []>} : vector<12x12xf32>, vector<12x8xf32>, vector<12x8xf32> -> vector<12x8xf32>
    %c0_29 = arith.constant 0 : index
    %c0_30 = arith.constant 0 : index
    %c16 = arith.constant 16 : index
    %75 = vector.load %arg5[%c0_29, %c0_30, %c16] : memref<1x12x32xf32, #tpu.memory_space<vmem>>, vector<1x12x8xf32>
    %76 = vector.shape_cast %75 : vector<1x12x8xf32> to vector<12x8xf32>
    %77 = vector.shape_cast %74 : vector<12x8xf32> to vector<1x12x8xf32>
    tpu.vector_store %arg5[%c0_29, %c0_30, %c16], %77 {strides = array<i32>} : memref<1x12x32xf32, #tpu.memory_space<vmem>>, vector<1x12x8xf32>,
    %78 = vector.extract_strided_slice %10 {offsets = [0, 24], sizes = [12, 8], strides = [1, 1]} : vector<12x32xf32> to vector<12x8xf32>
    %79 = vector.extract_strided_slice %12 {offsets = [0, 24], sizes = [12, 8], strides = [1, 1]} : vector<12x32xf32> to vector<12x8xf32>
    %80 = vector.extract_strided_slice %14 {offsets = [0, 24], sizes = [12, 8], strides = [1, 1]} : vector<12x32xf32> to vector<12x8xf32>
    %cst_31 = arith.constant dense<0.000000e+00> : vector<12x12xf32>
    %81 = tpu.matmul %78, %79, %cst_31 {dimension_numbers = #tpu.dot_dimension_numbers<[1], [1], [0], [0], [0, 0, 1, 0], [], []>} : vector<12x8xf32>, vector<12x8xf32>, vector<12x12xf32> -> vector<12x12xf32>
    %cst_32 = arith.constant 0.353553385 : f32
    %82 = vector.broadcast %cst_32 : f32 to vector<12x12xf32>
    %83 = arith.mulf %81, %82 : vector<12x12xf32>
    %84 = arith.addf %83, %8 : vector<12x12xf32>
    %cst_33 = arith.constant dense<0xFF800000> : vector<12xf32>
    %85 = vector.multi_reduction <maximumf>, %84, %cst_33 [1] : vector<12x12xf32> to vector<12xf32>
    %86 = vector.shape_cast %85 : vector<12xf32> to vector<12x1xf32>
    %87 = vector.broadcast %86 : vector<12x1xf32> to vector<12x12xf32>
    %88 = arith.subf %84, %87 : vector<12x12xf32>
    %89 = math.exp %88 : vector<12x12xf32>
    %cst_34 = arith.constant dense<0.000000e+00> : vector<12xf32>
    %90 = vector.multi_reduction <add>, %89, %cst_34 [1] : vector<12x12xf32> to vector<12xf32>
    %91 = vector.shape_cast %90 : vector<12xf32> to vector<12x1xf32>
    %92 = tpu.reciprocal %91 : vector<12x1xf32> -> vector<12x1xf32>
    %93 = vector.broadcast %92 : vector<12x1xf32> to vector<12x12xf32>
    %94 = arith.mulf %89, %93 : vector<12x12xf32>
    %cst_35 = arith.constant dense<0.000000e+00> : vector<12x8xf32>
    %95 = tpu.matmul %94, %80, %cst_35 {dimension_numbers = #tpu.dot_dimension_numbers<[1], [0], [0], [1], [0, 0, 1, 1], [], []>} : vector<12x12xf32>, vector<12x8xf32>, vector<12x8xf32> -> vector<12x8xf32>
    %c0_36 = arith.constant 0 : index
    %c0_37 = arith.constant 0 : index
    %c24 = arith.constant 24 : index
    %96 = vector.load %arg5[%c0_36, %c0_37, %c24] : memref<1x12x32xf32, #tpu.memory_space<vmem>>, vector<1x12x8xf32>
    %97 = vector.shape_cast %96 : vector<1x12x8xf32> to vector<12x8xf32>
    %98 = vector.shape_cast %95 : vector<12x8xf32> to vector<1x12x8xf32>
    tpu.vector_store %arg5[%c0_36, %c0_37, %c24], %98 {strides = array<i32>} : memref<1x12x32xf32, #tpu.memory_space<vmem>>, vector<1x12x8xf32>,
    return
  }
  func.func @transform_0(%arg0: i32, %arg1: i32) -> (i32, i32, i32) {
    %c0_i32 = arith.constant 0 : i32
    %c0_i32_0 = arith.constant 0 : i32
    return %arg0, %c0_i32, %arg1 : i32, i32, i32
  }
  func.func @transform_1(%arg0: i32, %arg1: i32) -> (i32, i32, i32) {
    %c0_i32 = arith.constant 0 : i32
    %c0_i32_0 = arith.constant 0 : i32
    return %arg0, %c0_i32, %arg1 : i32, i32, i32
  }
  func.func @transform_2(%arg0: i32, %arg1: i32) -> (i32, i32, i32) {
    %c0_i32 = arith.constant 0 : i32
    %c0_i32_0 = arith.constant 0 : i32
    return %arg0, %c0_i32, %arg1 : i32, i32, i32
  }
  func.func @transform_3(%arg0: i32, %arg1: i32) -> (i32, i32, i32) {
    %c0_i32 = arith.constant 0 : i32
    %c0_i32_0 = arith.constant 0 : i32
    return %arg0, %c0_i32, %arg1 : i32, i32, i32
  }
}

module attributes {stable_mosaic.version = 11 : i64} {
  func.func @_linear_kernel(%arg0: i32, %arg1: i32, %arg2: i32, %arg3: memref<24x32xf32, #tpu.memory_space<vmem>>, %arg4: memref<32x32xf32, #tpu.memory_space<vmem>>, %arg5: memref<1x32xf32, #tpu.memory_space<vmem>>, %arg6: memref<24x32xf32, #tpu.memory_space<vmem>>, %arg7: memref<24x32xf32, #tpu.memory_space<vmem>>) attributes {dimension_semantics = [#tpu.dimension_semantics<parallel>, #tpu.dimension_semantics<parallel>, #tpu.dimension_semantics<arbitrary>], iteration_bounds = array<i64: 1, 1, 1>, scalar_prefetch = 0 : i64, scratch_operands = 1 : i64, tpu.core_type = #tpu.core_type<tc>, window_params = [{transform_indices = @transform_0, window_bounds = array<i64: 24, 32>}, {transform_indices = @transform_1, window_bounds = array<i64: 32, 32>}, {transform_indices = @transform_2, window_bounds = array<i64: 1, 32>}, {transform_indices = @transform_3, window_bounds = array<i64: 24, 32>}]} {
    %c0_i32 = arith.constant 0 : i32
    %0 = arith.cmpi eq, %arg2, %c0_i32 : i32
    %1 = arith.extui %0 : i1 to i32
    %c0_i32_0 = arith.constant 0 : i32
    %2 = arith.cmpi ne, %1, %c0_i32_0 : i32
    scf.if %2 {
      %cst_10 = arith.constant 0.000000e+00 : f32
      %12 = vector.broadcast %cst_10 : f32 to vector<24x32xf32>
      %c0_11 = arith.constant 0 : index
      %c0_12 = arith.constant 0 : index
      %13 = vector.load %arg7[%c0_11, %c0_12] : memref<24x32xf32, #tpu.memory_space<vmem>>, vector<24x32xf32>
      tpu.vector_store %arg7[%c0_11, %c0_12], %12 {strides = array<i32>} : memref<24x32xf32, #tpu.memory_space<vmem>>, vector<24x32xf32>,
    } else {
    }
    %c0 = arith.constant 0 : index
    %c0_1 = arith.constant 0 : index
    %3 = vector.load %arg7[%c0, %c0_1] : memref<24x32xf32, #tpu.memory_space<vmem>>, vector<24x32xf32>
    %c0_2 = arith.constant 0 : index
    %c0_3 = arith.constant 0 : index
    %4 = vector.load %arg3[%c0_2, %c0_3] : memref<24x32xf32, #tpu.memory_space<vmem>>, vector<24x32xf32>
    %c0_4 = arith.constant 0 : index
    %c0_5 = arith.constant 0 : index
    %5 = vector.load %arg4[%c0_4, %c0_5] : memref<32x32xf32, #tpu.memory_space<vmem>>, vector<32x32xf32>
    %cst = arith.constant dense<0.000000e+00> : vector<24x32xf32>
    %6 = tpu.matmul %4, %5, %cst {dimension_numbers = #tpu.dot_dimension_numbers<[1], [0], [0], [1], [0, 0, 1, 1], [], []>} : vector<24x32xf32>, vector<32x32xf32>, vector<24x32xf32> -> vector<24x32xf32>
    %7 = arith.addf %3, %6 : vector<24x32xf32>
    %c0_6 = arith.constant 0 : index
    %c0_7 = arith.constant 0 : index
    %8 = vector.load %arg7[%c0_6, %c0_7] : memref<24x32xf32, #tpu.memory_space<vmem>>, vector<24x32xf32>
    tpu.vector_store %arg7[%c0_6, %c0_7], %7 {strides = array<i32>} : memref<24x32xf32, #tpu.memory_space<vmem>>, vector<24x32xf32>,
    %c0_i32_8 = arith.constant 0 : i32
    %9 = arith.cmpi eq, %arg2, %c0_i32_8 : i32
    %10 = arith.extui %9 : i1 to i32
    %c0_i32_9 = arith.constant 0 : i32
    %11 = arith.cmpi ne, %10, %c0_i32_9 : i32
    scf.if %11 {
      %c0_10 = arith.constant 0 : index
      %c0_11 = arith.constant 0 : index
      %12 = vector.load %arg7[%c0_10, %c0_11] : memref<24x32xf32, #tpu.memory_space<vmem>>, vector<24x32xf32>
      %c0_12 = arith.constant 0 : index
      %c0_13 = arith.constant 0 : index
      %13 = vector.load %arg5[%c0_12, %c0_13] : memref<1x32xf32, #tpu.memory_space<vmem>>, vector<1x32xf32>
      %14 = vector.broadcast %13 : vector<1x32xf32> to vector<24x32xf32>
      %15 = arith.addf %12, %14 : vector<24x32xf32>
      %c0_14 = arith.constant 0 : index
      %c0_15 = arith.constant 0 : index
      %16 = vector.load %arg6[%c0_14, %c0_15] : memref<24x32xf32, #tpu.memory_space<vmem>>, vector<24x32xf32>
      tpu.vector_store %arg6[%c0_14, %c0_15], %15 {strides = array<i32>} : memref<24x32xf32, #tpu.memory_space<vmem>>, vector<24x32xf32>,
    } else {
    }
    return
  }
  func.func @transform_0(%arg0: i32, %arg1: i32, %arg2: i32) -> (i32, i32) {
    %c0_i32 = arith.constant 0 : i32
    return %arg0, %arg2 : i32, i32
  }
  func.func @transform_1(%arg0: i32, %arg1: i32, %arg2: i32) -> (i32, i32) {
    %c0_i32 = arith.constant 0 : i32
    return %arg2, %arg1 : i32, i32
  }
  func.func @transform_2(%arg0: i32, %arg1: i32, %arg2: i32) -> (i32, i32) {
    %c0_i32 = arith.constant 0 : i32
    %c0_i32_0 = arith.constant 0 : i32
    return %c0_i32, %arg1 : i32, i32
  }
  func.func @transform_3(%arg0: i32, %arg1: i32, %arg2: i32) -> (i32, i32) {
    %c0_i32 = arith.constant 0 : i32
    return %arg0, %arg1 : i32, i32
  }
}

module attributes {stable_mosaic.version = 11 : i64} {
  func.func @_linear_kernel(%arg0: i32, %arg1: i32, %arg2: i32, %arg3: memref<24x32xf32, #tpu.memory_space<vmem>>, %arg4: memref<32x64xf32, #tpu.memory_space<vmem>>, %arg5: memref<1x64xf32, #tpu.memory_space<vmem>>, %arg6: memref<24x64xf32, #tpu.memory_space<vmem>>, %arg7: memref<24x64xf32, #tpu.memory_space<vmem>>) attributes {dimension_semantics = [#tpu.dimension_semantics<parallel>, #tpu.dimension_semantics<parallel>, #tpu.dimension_semantics<arbitrary>], iteration_bounds = array<i64: 1, 1, 1>, scalar_prefetch = 0 : i64, scratch_operands = 1 : i64, tpu.core_type = #tpu.core_type<tc>, window_params = [{transform_indices = @transform_0, window_bounds = array<i64: 24, 32>}, {transform_indices = @transform_1, window_bounds = array<i64: 32, 64>}, {transform_indices = @transform_2, window_bounds = array<i64: 1, 64>}, {transform_indices = @transform_3, window_bounds = array<i64: 24, 64>}]} {
    %c0_i32 = arith.constant 0 : i32
    %0 = arith.cmpi eq, %arg2, %c0_i32 : i32
    %1 = arith.extui %0 : i1 to i32
    %c0_i32_0 = arith.constant 0 : i32
    %2 = arith.cmpi ne, %1, %c0_i32_0 : i32
    scf.if %2 {
      %cst_10 = arith.constant 0.000000e+00 : f32
      %12 = vector.broadcast %cst_10 : f32 to vector<24x64xf32>
      %c0_11 = arith.constant 0 : index
      %c0_12 = arith.constant 0 : index
      %13 = vector.load %arg7[%c0_11, %c0_12] : memref<24x64xf32, #tpu.memory_space<vmem>>, vector<24x64xf32>
      tpu.vector_store %arg7[%c0_11, %c0_12], %12 {strides = array<i32>} : memref<24x64xf32, #tpu.memory_space<vmem>>, vector<24x64xf32>,
    } else {
    }
    %c0 = arith.constant 0 : index
    %c0_1 = arith.constant 0 : index
    %3 = vector.load %arg7[%c0, %c0_1] : memref<24x64xf32, #tpu.memory_space<vmem>>, vector<24x64xf32>
    %c0_2 = arith.constant 0 : index
    %c0_3 = arith.constant 0 : index
    %4 = vector.load %arg3[%c0_2, %c0_3] : memref<24x32xf32, #tpu.memory_space<vmem>>, vector<24x32xf32>
    %c0_4 = arith.constant 0 : index
    %c0_5 = arith.constant 0 : index
    %5 = vector.load %arg4[%c0_4, %c0_5] : memref<32x64xf32, #tpu.memory_space<vmem>>, vector<32x64xf32>
    %cst = arith.constant dense<0.000000e+00> : vector<24x64xf32>
    %6 = tpu.matmul %4, %5, %cst {dimension_numbers = #tpu.dot_dimension_numbers<[1], [0], [0], [1], [0, 0, 1, 1], [], []>} : vector<24x32xf32>, vector<32x64xf32>, vector<24x64xf32> -> vector<24x64xf32>
    %7 = arith.addf %3, %6 : vector<24x64xf32>
    %c0_6 = arith.constant 0 : index
    %c0_7 = arith.constant 0 : index
    %8 = vector.load %arg7[%c0_6, %c0_7] : memref<24x64xf32, #tpu.memory_space<vmem>>, vector<24x64xf32>
    tpu.vector_store %arg7[%c0_6, %c0_7], %7 {strides = array<i32>} : memref<24x64xf32, #tpu.memory_space<vmem>>, vector<24x64xf32>,
    %c0_i32_8 = arith.constant 0 : i32
    %9 = arith.cmpi eq, %arg2, %c0_i32_8 : i32
    %10 = arith.extui %9 : i1 to i32
    %c0_i32_9 = arith.constant 0 : i32
    %11 = arith.cmpi ne, %10, %c0_i32_9 : i32
    scf.if %11 {
      %c0_10 = arith.constant 0 : index
      %c0_11 = arith.constant 0 : index
      %12 = vector.load %arg7[%c0_10, %c0_11] : memref<24x64xf32, #tpu.memory_space<vmem>>, vector<24x64xf32>
      %c0_12 = arith.constant 0 : index
      %c0_13 = arith.constant 0 : index
      %13 = vector.load %arg5[%c0_12, %c0_13] : memref<1x64xf32, #tpu.memory_space<vmem>>, vector<1x64xf32>
      %14 = vector.broadcast %13 : vector<1x64xf32> to vector<24x64xf32>
      %15 = arith.addf %12, %14 : vector<24x64xf32>
      %c0_14 = arith.constant 0 : index
      %c0_15 = arith.constant 0 : index
      %16 = vector.load %arg6[%c0_14, %c0_15] : memref<24x64xf32, #tpu.memory_space<vmem>>, vector<24x64xf32>
      tpu.vector_store %arg6[%c0_14, %c0_15], %15 {strides = array<i32>} : memref<24x64xf32, #tpu.memory_space<vmem>>, vector<24x64xf32>,
    } else {
    }
    return
  }
  func.func @transform_0(%arg0: i32, %arg1: i32, %arg2: i32) -> (i32, i32) {
    %c0_i32 = arith.constant 0 : i32
    return %arg0, %arg2 : i32, i32
  }
  func.func @transform_1(%arg0: i32, %arg1: i32, %arg2: i32) -> (i32, i32) {
    %c0_i32 = arith.constant 0 : i32
    return %arg2, %arg1 : i32, i32
  }
  func.func @transform_2(%arg0: i32, %arg1: i32, %arg2: i32) -> (i32, i32) {
    %c0_i32 = arith.constant 0 : i32
    %c0_i32_0 = arith.constant 0 : i32
    return %c0_i32, %arg1 : i32, i32
  }
  func.func @transform_3(%arg0: i32, %arg1: i32, %arg2: i32) -> (i32, i32) {
    %c0_i32 = arith.constant 0 : i32
    return %arg0, %arg1 : i32, i32
  }
}

module attributes {stable_mosaic.version = 11 : i64} {
  func.func @_add_ln_kernel(%arg0: i32, %arg1: i32, %arg2: memref<1x12x32xf32, #tpu.memory_space<vmem>>, %arg3: memref<1x12x32xf32, #tpu.memory_space<vmem>>, %arg4: memref<1x1x32xf32, #tpu.memory_space<vmem>>, %arg5: memref<1x1x32xf32, #tpu.memory_space<vmem>>, %arg6: memref<1x12x32xf32, #tpu.memory_space<vmem>>) attributes {dimension_semantics = [#tpu.dimension_semantics<parallel>, #tpu.dimension_semantics<parallel>], iteration_bounds = array<i64: 2, 1>, scalar_prefetch = 0 : i64, scratch_operands = 0 : i64, tpu.core_type = #tpu.core_type<tc>, window_params = [{transform_indices = @transform_0, window_bounds = array<i64: 1, 12, 32>}, {transform_indices = @transform_1, window_bounds = array<i64: 1, 12, 32>}, {pipeline_mode = #tpu.pipeline_mode<synchronous>, transform_indices = @transform_2, window_bounds = array<i64: 1, 1, 32>}, {pipeline_mode = #tpu.pipeline_mode<synchronous>, transform_indices = @transform_3, window_bounds = array<i64: 1, 1, 32>}, {transform_indices = @transform_4, window_bounds = array<i64: 1, 12, 32>}]} {
    %c0 = arith.constant 0 : index
    %c0_0 = arith.constant 0 : index
    %c0_1 = arith.constant 0 : index
    %0 = vector.load %arg2[%c0, %c0_0, %c0_1] : memref<1x12x32xf32, #tpu.memory_space<vmem>>, vector<1x12x32xf32>
    %c0_2 = arith.constant 0 : index
    %c0_3 = arith.constant 0 : index
    %c0_4 = arith.constant 0 : index
    %1 = vector.load %arg3[%c0_2, %c0_3, %c0_4] : memref<1x12x32xf32, #tpu.memory_space<vmem>>, vector<1x12x32xf32>
    %2 = arith.addf %0, %1 : vector<1x12x32xf32>
    %cst = arith.constant dense<0.000000e+00> : vector<1x12xf32>
    %3 = vector.multi_reduction <add>, %2, %cst [2] : vector<1x12x32xf32> to vector<1x12xf32>
    %4 = vector.shape_cast %3 : vector<1x12xf32> to vector<1x12x1xf32>
    %cst_5 = arith.constant 3.200000e+01 : f32
    %5 = vector.broadcast %cst_5 : f32 to vector<1x12x1xf32>
    %6 = arith.divf %4, %5 : vector<1x12x1xf32>
    %7 = vector.broadcast %6 : vector<1x12x1xf32> to vector<1x12x32xf32>
    %8 = arith.subf %2, %7 : vector<1x12x32xf32>
    %9 = arith.mulf %8, %8 : vector<1x12x32xf32>
    %cst_6 = arith.constant dense<0.000000e+00> : vector<1x12xf32>
    %10 = vector.multi_reduction <add>, %9, %cst_6 [2] : vector<1x12x32xf32> to vector<1x12xf32>
    %11 = vector.shape_cast %10 : vector<1x12xf32> to vector<1x12x1xf32>
    %cst_7 = arith.constant 3.200000e+01 : f32
    %12 = vector.broadcast %cst_7 : f32 to vector<1x12x1xf32>
    %13 = arith.divf %11, %12 : vector<1x12x1xf32>
    %14 = vector.broadcast %6 : vector<1x12x1xf32> to vector<1x12x32xf32>
    %15 = arith.subf %2, %14 : vector<1x12x32xf32>
    %cst_8 = arith.constant 9.99999996E-13 : f32
    %16 = vector.broadcast %cst_8 : f32 to vector<1x12x1xf32>
    %17 = arith.addf %13, %16 : vector<1x12x1xf32>
    %18 = math.rsqrt %17 : vector<1x12x1xf32>
    %19 = vector.broadcast %18 : vector<1x12x1xf32> to vector<1x12x32xf32>
    %20 = arith.mulf %15, %19 : vector<1x12x32xf32>
    %c0_9 = arith.constant 0 : index
    %c0_10 = arith.constant 0 : index
    %c0_11 = arith.constant 0 : index
    %21 = vector.load %arg4[%c0_9, %c0_10, %c0_11] : memref<1x1x32xf32, #tpu.memory_space<vmem>>, vector<1x1x32xf32>
    %22 = vector.broadcast %21 : vector<1x1x32xf32> to vector<1x12x32xf32>
    %23 = arith.mulf %20, %22 : vector<1x12x32xf32>
    %c0_12 = arith.constant 0 : index
    %c0_13 = arith.constant 0 : index
    %c0_14 = arith.constant 0 : index
    %24 = vector.load %arg5[%c0_12, %c0_13, %c0_14] : memref<1x1x32xf32, #tpu.memory_space<vmem>>, vector<1x1x32xf32>
    %25 = vector.broadcast %24 : vector<1x1x32xf32> to vector<1x12x32xf32>
    %26 = arith.addf %23, %25 : vector<1x12x32xf32>
    %c0_15 = arith.constant 0 : index
    %c0_16 = arith.constant 0 : index
    %c0_17 = arith.constant 0 : index
    %27 = vector.load %arg6[%c0_15, %c0_16, %c0_17] : memref<1x12x32xf32, #tpu.memory_space<vmem>>, vector<1x12x32xf32>
    tpu.vector_store %arg6[%c0_15, %c0_16, %c0_17], %26 {strides = array<i32>} : memref<1x12x32xf32, #tpu.memory_space<vmem>>, vector<1x12x32xf32>,
    return
  }
  func.func @transform_0(%arg0: i32, %arg1: i32) -> (i32, i32, i32) {
    %c0_i32 = arith.constant 0 : i32
    %c0_i32_0 = arith.constant 0 : i32
    return %arg0, %arg1, %c0_i32 : i32, i32, i32
  }
  func.func @transform_1(%arg0: i32, %arg1: i32) -> (i32, i32, i32) {
    %c0_i32 = arith.constant 0 : i32
    %c0_i32_0 = arith.constant 0 : i32
    return %arg0, %arg1, %c0_i32 : i32, i32, i32
  }
  func.func @transform_2(%arg0: i32, %arg1: i32) -> (i32, i32, i32) {
    %c0_i32 = arith.constant 0 : i32
    %c0_i32_0 = arith.constant 0 : i32
    %c0_i32_1 = arith.constant 0 : i32
    %c0_i32_2 = arith.constant 0 : i32
    return %c0_i32, %c0_i32_0, %c0_i32_1 : i32, i32, i32
  }
  func.func @transform_3(%arg0: i32, %arg1: i32) -> (i32, i32, i32) {
    %c0_i32 = arith.constant 0 : i32
    %c0_i32_0 = arith.constant 0 : i32
    %c0_i32_1 = arith.constant 0 : i32
    %c0_i32_2 = arith.constant 0 : i32
    return %c0_i32, %c0_i32_0, %c0_i32_1 : i32, i32, i32
  }
  func.func @transform_4(%arg0: i32, %arg1: i32) -> (i32, i32, i32) {
    %c0_i32 = arith.constant 0 : i32
    %c0_i32_0 = arith.constant 0 : i32
    return %arg0, %arg1, %c0_i32 : i32, i32, i32
  }
}

module attributes {stable_mosaic.version = 11 : i64} {
  func.func @_linear_kernel(%arg0: i32, %arg1: i32, %arg2: i32, %arg3: memref<24x64xf32, #tpu.memory_space<vmem>>, %arg4: memref<64x32xf32, #tpu.memory_space<vmem>>, %arg5: memref<1x32xf32, #tpu.memory_space<vmem>>, %arg6: memref<24x32xf32, #tpu.memory_space<vmem>>, %arg7: memref<24x32xf32, #tpu.memory_space<vmem>>) attributes {dimension_semantics = [#tpu.dimension_semantics<parallel>, #tpu.dimension_semantics<parallel>, #tpu.dimension_semantics<arbitrary>], iteration_bounds = array<i64: 1, 1, 1>, scalar_prefetch = 0 : i64, scratch_operands = 1 : i64, tpu.core_type = #tpu.core_type<tc>, window_params = [{transform_indices = @transform_0, window_bounds = array<i64: 24, 64>}, {transform_indices = @transform_1, window_bounds = array<i64: 64, 32>}, {transform_indices = @transform_2, window_bounds = array<i64: 1, 32>}, {transform_indices = @transform_3, window_bounds = array<i64: 24, 32>}]} {
    %c0_i32 = arith.constant 0 : i32
    %0 = arith.cmpi eq, %arg2, %c0_i32 : i32
    %1 = arith.extui %0 : i1 to i32
    %c0_i32_0 = arith.constant 0 : i32
    %2 = arith.cmpi ne, %1, %c0_i32_0 : i32
    scf.if %2 {
      %cst_10 = arith.constant 0.000000e+00 : f32
      %12 = vector.broadcast %cst_10 : f32 to vector<24x32xf32>
      %c0_11 = arith.constant 0 : index
      %c0_12 = arith.constant 0 : index
      %13 = vector.load %arg7[%c0_11, %c0_12] : memref<24x32xf32, #tpu.memory_space<vmem>>, vector<24x32xf32>
      tpu.vector_store %arg7[%c0_11, %c0_12], %12 {strides = array<i32>} : memref<24x32xf32, #tpu.memory_space<vmem>>, vector<24x32xf32>,
    } else {
    }
    %c0 = arith.constant 0 : index
    %c0_1 = arith.constant 0 : index
    %3 = vector.load %arg7[%c0, %c0_1] : memref<24x32xf32, #tpu.memory_space<vmem>>, vector<24x32xf32>
    %c0_2 = arith.constant 0 : index
    %c0_3 = arith.constant 0 : index
    %4 = vector.load %arg3[%c0_2, %c0_3] : memref<24x64xf32, #tpu.memory_space<vmem>>, vector<24x64xf32>
    %c0_4 = arith.constant 0 : index
    %c0_5 = arith.constant 0 : index
    %5 = vector.load %arg4[%c0_4, %c0_5] : memref<64x32xf32, #tpu.memory_space<vmem>>, vector<64x32xf32>
    %cst = arith.constant dense<0.000000e+00> : vector<24x32xf32>
    %6 = tpu.matmul %4, %5, %cst {dimension_numbers = #tpu.dot_dimension_numbers<[1], [0], [0], [1], [0, 0, 1, 1], [], []>} : vector<24x64xf32>, vector<64x32xf32>, vector<24x32xf32> -> vector<24x32xf32>
    %7 = arith.addf %3, %6 : vector<24x32xf32>
    %c0_6 = arith.constant 0 : index
    %c0_7 = arith.constant 0 : index
    %8 = vector.load %arg7[%c0_6, %c0_7] : memref<24x32xf32, #tpu.memory_space<vmem>>, vector<24x32xf32>
    tpu.vector_store %arg7[%c0_6, %c0_7], %7 {strides = array<i32>} : memref<24x32xf32, #tpu.memory_space<vmem>>, vector<24x32xf32>,
    %c0_i32_8 = arith.constant 0 : i32
    %9 = arith.cmpi eq, %arg2, %c0_i32_8 : i32
    %10 = arith.extui %9 : i1 to i32
    %c0_i32_9 = arith.constant 0 : i32
    %11 = arith.cmpi ne, %10, %c0_i32_9 : i32
    scf.if %11 {
      %c0_10 = arith.constant 0 : index
      %c0_11 = arith.constant 0 : index
      %12 = vector.load %arg7[%c0_10, %c0_11] : memref<24x32xf32, #tpu.memory_space<vmem>>, vector<24x32xf32>
      %c0_12 = arith.constant 0 : index
      %c0_13 = arith.constant 0 : index
      %13 = vector.load %arg5[%c0_12, %c0_13] : memref<1x32xf32, #tpu.memory_space<vmem>>, vector<1x32xf32>
      %14 = vector.broadcast %13 : vector<1x32xf32> to vector<24x32xf32>
      %15 = arith.addf %12, %14 : vector<24x32xf32>
      %c0_14 = arith.constant 0 : index
      %c0_15 = arith.constant 0 : index
      %16 = vector.load %arg6[%c0_14, %c0_15] : memref<24x32xf32, #tpu.memory_space<vmem>>, vector<24x32xf32>
      tpu.vector_store %arg6[%c0_14, %c0_15], %15 {strides = array<i32>} : memref<24x32xf32, #tpu.memory_space<vmem>>, vector<24x32xf32>,
    } else {
    }
    return
  }
  func.func @transform_0(%arg0: i32, %arg1: i32, %arg2: i32) -> (i32, i32) {
    %c0_i32 = arith.constant 0 : i32
    return %arg0, %arg2 : i32, i32
  }
  func.func @transform_1(%arg0: i32, %arg1: i32, %arg2: i32) -> (i32, i32) {
    %c0_i32 = arith.constant 0 : i32
    return %arg2, %arg1 : i32, i32
  }
  func.func @transform_2(%arg0: i32, %arg1: i32, %arg2: i32) -> (i32, i32) {
    %c0_i32 = arith.constant 0 : i32
    %c0_i32_0 = arith.constant 0 : i32
    return %c0_i32, %arg1 : i32, i32
  }
  func.func @transform_3(%arg0: i32, %arg1: i32, %arg2: i32) -> (i32, i32) {
    %c0_i32 = arith.constant 0 : i32
    return %arg0, %arg1 : i32, i32
  }
}

module attributes {stable_mosaic.version = 11 : i64} {
  func.func @_linear_kernel(%arg0: i32, %arg1: i32, %arg2: i32, %arg3: memref<16x32xf32, #tpu.memory_space<vmem>>, %arg4: memref<96x32xf32, #tpu.memory_space<vmem>>, %arg5: memref<1x96xf32, #tpu.memory_space<vmem>>, %arg6: memref<16x96xf32, #tpu.memory_space<vmem>>, %arg7: memref<16x96xf32, #tpu.memory_space<vmem>>) attributes {dimension_semantics = [#tpu.dimension_semantics<parallel>, #tpu.dimension_semantics<parallel>, #tpu.dimension_semantics<arbitrary>], iteration_bounds = array<i64: 1, 1, 1>, scalar_prefetch = 0 : i64, scratch_operands = 1 : i64, tpu.core_type = #tpu.core_type<tc>, window_params = [{transform_indices = @transform_0, window_bounds = array<i64: 16, 32>}, {transform_indices = @transform_1, window_bounds = array<i64: 96, 32>}, {transform_indices = @transform_2, window_bounds = array<i64: 1, 96>}, {transform_indices = @transform_3, window_bounds = array<i64: 16, 96>}]} {
    %c0_i32 = arith.constant 0 : i32
    %0 = arith.cmpi eq, %arg2, %c0_i32 : i32
    %1 = arith.extui %0 : i1 to i32
    %c0_i32_0 = arith.constant 0 : i32
    %2 = arith.cmpi ne, %1, %c0_i32_0 : i32
    scf.if %2 {
      %cst_10 = arith.constant 0.000000e+00 : f32
      %12 = vector.broadcast %cst_10 : f32 to vector<16x96xf32>
      %c0_11 = arith.constant 0 : index
      %c0_12 = arith.constant 0 : index
      %13 = vector.load %arg7[%c0_11, %c0_12] : memref<16x96xf32, #tpu.memory_space<vmem>>, vector<16x96xf32>
      tpu.vector_store %arg7[%c0_11, %c0_12], %12 {strides = array<i32>} : memref<16x96xf32, #tpu.memory_space<vmem>>, vector<16x96xf32>,
    } else {
    }
    %c0 = arith.constant 0 : index
    %c0_1 = arith.constant 0 : index
    %3 = vector.load %arg7[%c0, %c0_1] : memref<16x96xf32, #tpu.memory_space<vmem>>, vector<16x96xf32>
    %c0_2 = arith.constant 0 : index
    %c0_3 = arith.constant 0 : index
    %4 = vector.load %arg3[%c0_2, %c0_3] : memref<16x32xf32, #tpu.memory_space<vmem>>, vector<16x32xf32>
    %c0_4 = arith.constant 0 : index
    %c0_5 = arith.constant 0 : index
    %5 = vector.load %arg4[%c0_4, %c0_5] : memref<96x32xf32, #tpu.memory_space<vmem>>, vector<96x32xf32>
    %cst = arith.constant dense<0.000000e+00> : vector<16x96xf32>
    %6 = tpu.matmul %4, %5, %cst {dimension_numbers = #tpu.dot_dimension_numbers<[1], [1], [0], [0], [0, 0, 1, 0], [], []>} : vector<16x32xf32>, vector<96x32xf32>, vector<16x96xf32> -> vector<16x96xf32>
    %7 = arith.addf %3, %6 : vector<16x96xf32>
    %c0_6 = arith.constant 0 : index
    %c0_7 = arith.constant 0 : index
    %8 = vector.load %arg7[%c0_6, %c0_7] : memref<16x96xf32, #tpu.memory_space<vmem>>, vector<16x96xf32>
    tpu.vector_store %arg7[%c0_6, %c0_7], %7 {strides = array<i32>} : memref<16x96xf32, #tpu.memory_space<vmem>>, vector<16x96xf32>,
    %c0_i32_8 = arith.constant 0 : i32
    %9 = arith.cmpi eq, %arg2, %c0_i32_8 : i32
    %10 = arith.extui %9 : i1 to i32
    %c0_i32_9 = arith.constant 0 : i32
    %11 = arith.cmpi ne, %10, %c0_i32_9 : i32
    scf.if %11 {
      %c0_10 = arith.constant 0 : index
      %c0_11 = arith.constant 0 : index
      %12 = vector.load %arg7[%c0_10, %c0_11] : memref<16x96xf32, #tpu.memory_space<vmem>>, vector<16x96xf32>
      %c0_12 = arith.constant 0 : index
      %c0_13 = arith.constant 0 : index
      %13 = vector.load %arg5[%c0_12, %c0_13] : memref<1x96xf32, #tpu.memory_space<vmem>>, vector<1x96xf32>
      %14 = vector.broadcast %13 : vector<1x96xf32> to vector<16x96xf32>
      %15 = arith.addf %12, %14 : vector<16x96xf32>
      %c0_14 = arith.constant 0 : index
      %c0_15 = arith.constant 0 : index
      %16 = vector.load %arg6[%c0_14, %c0_15] : memref<16x96xf32, #tpu.memory_space<vmem>>, vector<16x96xf32>
      tpu.vector_store %arg6[%c0_14, %c0_15], %15 {strides = array<i32>} : memref<16x96xf32, #tpu.memory_space<vmem>>, vector<16x96xf32>,
    } else {
    }
    return
  }
  func.func @transform_0(%arg0: i32, %arg1: i32, %arg2: i32) -> (i32, i32) {
    %c0_i32 = arith.constant 0 : i32
    return %arg0, %arg2 : i32, i32
  }
  func.func @transform_1(%arg0: i32, %arg1: i32, %arg2: i32) -> (i32, i32) {
    %c0_i32 = arith.constant 0 : i32
    return %arg1, %arg2 : i32, i32
  }
  func.func @transform_2(%arg0: i32, %arg1: i32, %arg2: i32) -> (i32, i32) {
    %c0_i32 = arith.constant 0 : i32
    %c0_i32_0 = arith.constant 0 : i32
    return %c0_i32, %arg1 : i32, i32
  }
  func.func @transform_3(%arg0: i32, %arg1: i32, %arg2: i32) -> (i32, i32) {
    %c0_i32 = arith.constant 0 : i32
    return %arg0, %arg1 : i32, i32
  }
}

</mosaic_0001>

<bundles_post_ra>
// kernel: _lambda_.17
= control target key start
LH: loop header
LB: loop body
LE: loop exit
PB: predicated region body
PF: predicated region fallthrough
CT: control target
= control target key end

     0   :  { %vm18_vm0 = vcmask 261120   ;;  %v148_v0 = vmov 0.0   ;;  %vm149_vm1 = vmmov 0   ;;  %vm28_vm2 = vcmask 392192   ;;  %s200_s1 = inlined_call_operand.vmem [shape: f32[48,32], index: 1, kind: input, shape index: {}]   ;;  %s201_s0 = inlined_call_operand.vmem [shape: f32[8,48], index: 0, kind: input, shape index: {}]   ;;  %s202_s2 = inlined_call_operand.vmem [shape: f32[1,32], index: 2, kind: input, shape index: {}]   ;;  %s203_s3 = inlined_call_operand.vmem [shape: f32[8,32], index: 3, kind: output, shape index: {}]  }
   0x1   :  { %131 = vmatprep.subr.mxu0 %v148_v0  ;;  %v27_v1 = vld [vmem:[%s200_s1 + $0x28] sm:$0xff]  ;;  %v26_v2 = vld [vmem:[%s200_s1 + $0x20] sm:$0xff]  ;;  %143 = vmatprep.mubr.msk.f32.mxu0 %vm149_vm1, %v148_v0  ;;  %19 = vst.msk [vmem:[#allocation2] sm:$0xff] %vm18_vm0, %v148_v0  ;;  %v25_v3 = vld [vmem:[%s200_s1 + $0x18] sm:$0xff] }
   0x2   :  { %132 = vmatpush3.msra.mxu0 %v27_v1  ;;  %v24_v4 = vld [vmem:[%s200_s1 + $0x10] sm:$0xff]  ;;  %v23_v5 = vld [vmem:[%s200_s1 + $0x8] sm:$0xff]  ;;  %v22_v6 = vld [vmem:[%s200_s1] sm:$0xff] }
   0x3   :  { %133 = vmatprep.subr.mxu0 %v148_v0  ;;  %v21_v7 = vld [vmem:[%s201_s0] sm:$0xff] }
   0x4   :  { %134 = vmatpush3.msra.mxu0 %v26_v2  ;;  %v123_v12 = vld [vmem:[%s202_s2] ss:$0 sm:$0xff] }
   0x5   :  { %135 = vmatprep.subr.mxu0 %v148_v0 }
   0x6   :  { %136 = vmatpush3.msra.mxu0 %v25_v3 }
   0x7   :  { %137 = vmatprep.subr.mxu0 %v148_v0 }
   0x8   :  { %138 = vmatpush3.msra.mxu0 %v24_v4  ;;  %v20_v8 = vld [vmem:[#allocation2] sm:$0xff] }
   0x9   :  { %139 = vmatprep.subr.mxu0 %v148_v0 }
   0xa   :  { %140 = vmatpush3.msra.mxu0 %v23_v5 }
   0xb   :  { %141 = vmatprep.subr.mxu0 %v148_v0 }
   0xc   :  { %142 = vmatpush3.msra.mxu0 %v22_v6 }
   0xd   :  { %144 = vmatmul.mubr.msk.f32.vlgmr.msra.gmra.mxu0 %vm28_vm2, %v21_v7 }
  0xcd   :  { %v98_v9 = vpop.f32.mrf.mxu0 }
  0xce   :  { %v102_v10 = vadd.f32 %v98_v9, %v20_v8 }
  0xcf   :  { %v145_v11 = vpop.f32.mrf.mxu0 }
  0xd0   :  { %104 = vst.msk [vmem:[#allocation2] sm:$0xff] %vm18_vm0, %v102_v10 }
  0xd7   :  { %v108_v13 = vld [vmem:[#allocation2] sm:$0xff] }
  0xd8   :  { %v116_v14 = vadd.f32 %v123_v12, %v108_v13 }
  0xda   :  { %117 = vst.msk [vmem:[%s203_s3] sm:$0xff] %vm18_vm0, %v116_v14 }

// kernel: _lambda_.19
= control target key start
LH: loop header
LB: loop body
LE: loop exit
PB: predicated region body
PF: predicated region fallthrough
CT: control target
= control target key end

     0   :  { %vm18_vm0 = vcmask 785408   ;;  %v190_v0 = vmov 0.0   ;;  %vm32_vm1 = vcmask 261120   ;;  %vm191_vm2 = vmmov 0   ;;  %s254_s1 = inlined_call_operand.vmem [shape: f32[32,96], index: 1, kind: input, shape index: {}]   ;;  %s255_s0 = inlined_call_operand.vmem [shape: f32[24,32], index: 0, kind: input, shape index: {}]   ;;  %s256_s2 = inlined_call_operand.vmem [shape: f32[1,96], index: 2, kind: input, shape index: {}]   ;;  %s257_s3 = inlined_call_operand.vmem [shape: f32[24,96], index: 3, kind: output, shape index: {}]  }
   0x1   :  { %180 = vmatprep.subr.mxu1 %v190_v0  ;;  %v31_v1 = vld [vmem:[%s254_s1 + $0x18] sm:$0xff]  ;;  %163 = vmatprep.subr.mxu0 %v190_v0  ;;  %v30_v2 = vld [vmem:[%s254_s1 + $0x10] sm:$0xff]  ;;  %20 = vst.msk [vmem:[#allocation2 + $0x8] sm:$0xff] %vm18_vm0, %v190_v0  ;;  %19 = vst.msk [vmem:[#allocation2] sm:$0xff] %vm18_vm0, %v190_v0 }
   0x2   :  { %21 = vst.msk [vmem:[#allocation2 + $0x10] sm:$0xff] %vm18_vm0, %v190_v0  ;;  %184 = vmatpush3.msra.mxu1 %v31_v1  ;;  %164 = vmatpush3.msra.mxu0 %v31_v1  ;;  %v29_v3 = vld [vmem:[%s254_s1 + $0x8] sm:$0xff]  ;;  %v28_v4 = vld [vmem:[%s254_s1] sm:$0xff]  ;;  %v27_v7 = vld [vmem:[%s255_s0 + $0x10] sm:$0xff] }
   0x3   :  { %181 = vmatprep.subr.mxu1 %v190_v0  ;;  %165 = vmatprep.subr.mxu0 %v190_v0  ;;  %v26_v5 = vld [vmem:[%s255_s0 + $0x8] sm:$0xff]  ;;  %v25_v6 = vld [vmem:[%s255_s0] sm:$0xff] }
   0x4   :  { %185 = vmatpush3.msra.mxu1 %v30_v2  ;;  %166 = vmatpush3.msra.mxu0 %v30_v2  ;;  %v155_v20 = vld [vmem:[%s256_s2] ss:$0 sm:$0xff] }
   0x5   :  { %182 = vmatprep.subr.mxu1 %v190_v0  ;;  %167 = vmatprep.subr.mxu0 %v190_v0 }
   0x6   :  { %186 = vmatpush3.msra.mxu1 %v29_v3  ;;  %168 = vmatpush3.msra.mxu0 %v29_v3 }
   0x7   :  { %183 = vmatprep.subr.mxu1 %v190_v0  ;;  %174 = vmatprep.mubr.msk.f32.mxu1 %vm191_vm2, %v190_v0 }
   0x8   :  { %187 = vmatpush3.msra.mxu1 %v28_v4  ;;  %169 = vmatprep.subr.mxu0 %v190_v0  ;;  %v23_v8 = vld [vmem:[#allocation2 + $0x8] sm:$0xff]  ;;  %v22_v10 = vld [vmem:[#allocation2] sm:$0xff] }
   0x9   :  { %175 = vmatmul.mubr.msk.f32.vlgmr.msra.gmra.mxu1 %vm32_vm1, %v26_v5  ;;  %170 = vmatpush3.msra.mxu0 %v28_v4  ;;  %v24_v14 = vld [vmem:[#allocation2 + $0x10] sm:$0xff] }
   0xa   :  { %171 = vmatprep.mubr.msk.f32.mxu0 %vm191_vm2, %v190_v0  ;;  %177 = vmatprep.mubr.msk.f32.mxu1 %vm191_vm2, %v190_v0 }
   0xb   :  { %172 = vmatmul.mubr.msk.f32.vlgmr.msra.gmra.mxu0 %vm32_vm1, %v25_v6 }
   0xd   :  { %178 = vmatmul.mubr.msk.f32.gmra.mxu1 %vm32_vm1, %v27_v7 }
  0xc9   :  { %v113_v9 = vpop.f32.mrf.mxu1 }
  0xca   :  { %v123_v11 = vadd.f32 %v113_v9, %v23_v8 }
  0xcb   :  { %v108_v12 = vpop.f32.mrf.mxu0  ;;  %v176_v13 = vpop.f32.mrf.mxu1 }
  0xcc   :  { %127 = vst.msk [vmem:[#allocation2 + $0x8] sm:$0xff] %vm18_vm0, %v123_v11  ;;  %v122_v15 = vadd.f32 %v108_v12, %v22_v10 }
  0xcd   :  { %v173_v16 = vpop.f32.mrf.mxu0  ;;  %v118_v17 = vpop.f32.mrf.mxu1 }
  0xce   :  { %126 = vst.msk [vmem:[#allocation2] sm:$0xff] %vm18_vm0, %v122_v15  ;;  %v124_v18 = vadd.f32 %v118_v17, %v24_v14 }
  0xcf   :  { %v179_v19 = vpop.f32.mrf.mxu1 }
  0xd0   :  { %128 = vst.msk [vmem:[#allocation2 + $0x10] sm:$0xff] %vm18_vm0, %v124_v18 }
  0xd3   :  { %v133_v21 = vld [vmem:[#allocation2 + $0x8] sm:$0xff] }
  0xd4   :  { %v143_v22 = vadd.f32 %v155_v20, %v133_v21 }
  0xd5   :  { %v132_v23 = vld [vmem:[#allocation2] sm:$0xff] }
  0xd6   :  { %146 = vst.msk [vmem:[%s257_s3 + $0x8] sm:$0xff] %vm18_vm0, %v143_v22  ;;  %v142_v24 = vadd.f32 %v155_v20, %v132_v23 }
  0xd7   :  { %v134_v25 = vld [vmem:[#allocation2 + $0x10] sm:$0xff] }
  0xd8   :  { %145 = vst.msk [vmem:[%s257_s3] sm:$0xff] %vm18_vm0, %v142_v24  ;;  %v144_v26 = vadd.f32 %v155_v20, %v134_v25 }
  0xda   :  { %147 = vst.msk [vmem:[%s257_s3 + $0x10] sm:$0xff] %vm18_vm0, %v144_v26 }

// kernel: _lambda_.18
= control target key start
LH: loop header
LB: loop body
LE: loop exit
PB: predicated region body
PF: predicated region fallthrough
CT: control target
= control target key end

     0   :  { %s453_s15 = smov 0   ;;  %s455_s16 = smov 0   ;;  %s498_s0 = inlined_call_operand.vmem [shape: f32[2,8,32], index: 0, kind: input, shape index: {}]   ;;  %s499_s1 = inlined_call_operand.vmem [shape: f32[1,8,32], index: 1, kind: input, shape index: {}]   ;;  %s500_s2 = inlined_call_operand.vmem [shape: f32[1,1,32], index: 2, kind: input, shape index: {}]   ;;  %s501_s3 = inlined_call_operand.vmem [shape: f32[1,1,32], index: 3, kind: input, shape index: {}]   ;;  %s502_s4 = inlined_call_operand.vmem [shape: f32[2,8,32], index: 4, kind: output, shape index: {}]  }
   0x1   :  { %s457_s17 = smov 0  }
   0x2 LB: > { %s26_s18 = sadd.s32 1, %s422_s16  ;;  %p371_p0 = scmp.ge.s32.totalorder %s426_s17, 1  ;;  %s426_s17 = sphi %s457_s17, %s14_s17   ;;  %s422_s16 = sphi %s455_s16, %s504_s16   ;;  %s418_s15 = sphi %s453_s15, %s503_s15  }
   0x3   : > { %p28_p1 = scmp.ge.s32.totalorder %s26_s18, 2  ;;  %p189_p2 = scmp.lt.s32.totalorder %s426_s17, 3 }
   0x5   : > { %s506_s18 = smov (%p28_p1, %s26_s18), 0  ;;  %p190_p3 = pnand %p371_p0, %p189_p2 }
   0x6   : > { %p223_p4 = scmp.lt.s32.totalorder (!%p190_p3), %s418_s15, 1 }
   0x7   : > { %193 = sbr.rel (%p190_p3) target bundleno = 327 (0x147), region = 36 }
   0xc   : > { %s508_s15 = smov (!%p223_p4, %s418_s15), 1  ;;  %v242_v0 = vld [vmem:[%s499_s1] sm:$0xff]  ;;  %vm244_vm0 = vcmask 261120  }
   0xd   : > { %s372_s19 = sshll.u32 %s508_s15, 3  ;;  %v374_v13 = vld [vmem:[%s500_s2] ss:$0 sm:$0xff] }
   0xe   : > { %s229_s24 = scalar_lea.vmem %s498_s0, %s372_s19  ;;  %v375_v15 = vld [vmem:[%s501_s3] ss:$0 sm:$0xff]  ;;  %s240_s5 = scalar_lea.vmem %s502_s4, %s372_s19 }
   0xf   : > { %v241_v1 = vld [vmem:[%s229_s24] sm:$0xff] }
  0x10   : > { %v243_v2 = vadd.f32 %v242_v0, %v241_v1 }
  0x12   : > { %v245_v3 = vsel %vm244_vm0, %v243_v2, 0.0 }
  0x13   : > { %246 = vadd.xlane.f32.xlu0 %v245_v3 }
  0x9c   : > { %v247_v4 = vpop.xlane.xlu0 %246 }
  0x9d   : > { %v249_v5 = vmul.f32 0.03125, %v247_v4 }
  0x9f   : > { %v250_v6 = vsub.f32 %v243_v2, %v249_v5 }
  0xa1   : > { %v251_v7 = vmul.f32 %v250_v6, %v250_v6 }
  0xa3   : > { %v252_v8 = vsel %vm244_vm0, %v251_v7, 0.0 }
  0xa4   : > { %253 = vadd.xlane.f32.xlu0 %v252_v8 }
 0x12d   : > { %v254_v9 = vpop.xlane.xlu0 %253 }
 0x12e   : > { %v255_v10 = vmul.f32 0.03125, %v254_v9 }
 0x130   : > { %v256_v11 = vadd.f32 1e-08, %v255_v10 }
 0x132   : > { %402 = vrsqrt.f32 %v256_v11 }
 0x13f   : > { %v403_v12 = vpop.eup %402 }
 0x140   : > { %v258_v14 = vmul.f32 %v403_v12, %v250_v6 }
 0x142   : > { %v266_v16 = vmul.f32 %v374_v13, %v258_v14 }
 0x144   : > { %v274_v17 = vadd.f32 %v375_v15, %v266_v16 }
 0x146   : > { %275 = vst.msk [vmem:[%s240_s5] sm:$0xff] %vm244_vm0, %v274_v17 }
 0x147 PF: > { %s14_s17 = sadd.s32 1, %s426_s17   ;;  %s503_s15 = smov %s422_s16 }
 0x148   : > { %p11_p5 = scmp.ge.s32.totalorder %s14_s17, 4   ;;  %s504_s16 = smov %s506_s18 }
 0x14a   :  { %13 = sbr.rel (!%p11_p5) target bundleno = 2 (0x2), region = 69 }

// kernel: _lambda_.20
= control target key start
LH: loop header
LB: loop body
LE: loop exit
PB: predicated region body
PF: predicated region fallthrough
CT: control target
= control target key end

     0   :  { %s1506_s12 = smov 0   ;;  %s1508_s13 = smov 0   ;;  %s1694_s0 = inlined_call_operand.vmem [shape: f32[2,12,32], index: 0, kind: input, shape index: {}]   ;;  %s1695_s1 = inlined_call_operand.vmem [shape: f32[2,12,32], index: 1, kind: input, shape index: {}]   ;;  %s1696_s2 = inlined_call_operand.vmem [shape: f32[2,12,32], index: 2, kind: input, shape index: {}]   ;;  %s1697_s3 = inlined_call_operand.vmem [shape: f32[2,12,32], index: 3, kind: output, shape index: {}]  }
   0x1   :  { %s1510_s14 = smov 0  }
   0x2 LB: > { %s25_s15 = sadd.s32 1, %s1473_s13  ;;  %p1261_p0 = scmp.ge.s32.totalorder %s1477_s14, 1  ;;  %s1477_s14 = sphi %s1510_s14, %s13_s14   ;;  %s1473_s13 = sphi %s1508_s13, %s1699_s13   ;;  %s1469_s12 = sphi %s1506_s12, %s1698_s12  }
   0x3   : > { %p27_p1 = scmp.ge.s32.totalorder %s25_s15, 2  ;;  %p186_p2 = scmp.lt.s32.totalorder %s1477_s14, 3 }
   0x5   : > { %s1701_s15 = smov (%p27_p1, %s25_s15), 0  ;;  %p187_p3 = pnand %p1261_p0, %p186_p2 }
   0x6   : > { %p232_p4 = scmp.lt.s32.totalorder (!%p187_p3), %s1469_s12, 1  ;;  %s1479_s23 = smov (!%p187_p3), 120  }
   0x7   : > { %190 = sbr.rel (%p187_p3) target bundleno = 2421 (0x975), region = 32  ;;  %s1481_s30 = smov (!%p187_p3), 112  }
   0x8   : > { %s1482_s4 = smov (!%p187_p3), 104   ;;  %s1483_s5 = smov (!%p187_p3), 8  }
   0x9   : > { %s1484_s6 = smov (!%p187_p3), 16   ;;  %s1485_s7 = smov (!%p187_p3), 24  }
   0xc   : > { %s1703_s12 = smov (!%p232_p4, %s1469_s12), 1  ;;  %vm282_vm0 = vcmask 64512   ;;  %v264_v4 = vlaneseq  ;;  %v1480_v10 = vmov -inf   ;;  %vm374_vm6 = vcmask 97280  }
   0xd   : > { %s1524_s16 = sshll.u32 %s1703_s12, 4  ;;  %vm378_vm7 = vcmask 93184   ;;  %vm404_vm8 = vcmask 1043456   ;;  %vm484_vm9 = vcmask 60416   ;;  %vm700_vm10 = vcmask 130112  }
   0xe   : > { %s247_s19 = scalar_lea.vmem %s1695_s1, %s1524_s16  ;;  %s239_s22 = scalar_lea.vmem %s1694_s0, %s1524_s16  ;;  %v265_v5 = vshrl.u32 %v264_v4, 7  ;;  %v268_v6 = vand.u32 127, %v264_v4  ;;  %vm702_vm11 = vcmask 126016   ;;  %vm919_vm12 = vcmask 191616  }
   0xf   : > { %v1530_v0 = vld [vmem:[%s247_s19 + $0x8] sm:$0xf]  ;;  %v1532_v1 = vld [vmem:[%s247_s19] sm:$0xff]  ;;  %s255_s26 = scalar_lea.vmem %s1696_s2, %s1524_s16  ;;  %s1598_s29 = scalar_lea.vmem %s1697_s3, %s1524_s16  ;;  %vm917_vm13 = vcmask 195712   ;;  %vm1136_vm14 = vcmask 257216   ;;  %vm1134_vm15 = vcmask 261312  }
  0x10   : > { %1336 = vmatprep.subr.msk.mxu0 %vm282_vm0, %v1530_v0  ;;  %v1540_v2 = vld [vmem:[%s239_s22] sm:$0xff]  ;;  %v1550_v3 = vld [vmem:[%s239_s22 + $0x8] sm:$0xf]  ;;  %490 = vrot.lane.b32.xlu1 %v1532_v1, %s1479_s23  ;;  %v266_v7 = vadd.s32 8, %v265_v5  ;;  %vm270_vm1 = vcmp.le.s32.totalorder %v268_v6, %v265_v5  ;;  %vm269_vm2 = vcmp.lt.s32.totalorder %v268_v6, 4 }
  0x11   : > { %1337 = vmatpush3.xpose.msk.msra.mxu0 %vm282_vm0, %v1530_v0  ;;  %1340 = vmatprep.mubr.msk.f32.mxu0 %vm282_vm0, %v1540_v2  ;;  %vm272_vm4 = vmor %vm269_vm2, %vm270_vm1  ;;  %v1574_v29 = vld [vmem:[%s255_s26 + $0x8] sm:$0xf]  ;;  %v1576_v30 = vld [vmem:[%s255_s26] sm:$0xff] }
  0x12   : > { %1338 = vmatprep.subr.msk.mxu0 %vm282_vm0, %v1532_v1  ;;  %vm271_vm3 = vcmp.le.s32.totalorder %v268_v6, %v266_v7  ;;  %v1558_v11 = vsel %vm272_vm4, 0.0, %v1480_v10  ;;  %1343 = vmatprep.subr.msk.mxu1 %vm404_vm8, %v1574_v29 }
  0x13   : > { %vm273_vm5 = vmor %vm269_vm2, %vm271_vm3  ;;  %1344 = vmatpush3.msk.msra.mxu1 %vm404_vm8, %v1574_v29 }
  0x14   : > { %486 = vrot.lane.b32.xlu1 %v1540_v2, %s1479_s23  ;;  %v1560_v14 = vsel %vm273_vm5, 0.0, %v1480_v10  ;;  %1345 = vmatprep.subr.mxu1 %v1576_v30 }
  0x15   : > { %1339 = vmatpush3.xpose.msk.msra.mxu0 %vm282_vm0, %v1532_v1  ;;  %1346 = vmatpush3.msra.mxu1 %v1576_v30 }
  0x18   : > { %1341 = vmatmul.mubr.msk.f32.vlgmr.msra.gmra.mxu0 %vm282_vm0, %v1550_v3 }
  0x82   : > { %v491_v32 = vpop.permute.xlu1 %490 }
  0x86   : > { %v487_v33 = vpop.permute.xlu1 %486 }
  0xd8   : > { %v1342_v8 = vpop.f32.mrf.mxu0 }
  0xd9   : > { %v371_v12 = vmul.f32 0.35355338, %v1342_v8 }
  0xda   : > { %v361_v9 = vpop.f32.mrf.mxu0 }
  0xdb   : > { %v370_v13 = vmul.f32 0.35355338, %v361_v9  ;;  %v373_v17 = vadd.f32 %v371_v12, %v1560_v14 }
  0xdd   : > { %v372_v15 = vadd.f32 %v370_v13, %v1558_v11  ;;  %v379_v18 = vsel %vm378_vm7, %v373_v17, -inf }
  0xdf   : > { %v375_v16 = vsel %vm374_vm6, %v372_v15, -inf }
  0xe0   : > { %376 = vmax.xlane.f32.xlu0 %v375_v16 }
  0xe4   : > { %380 = vmax.xlane.f32.xlu0 %v379_v18 }
  0xfa   : > { %492 = vrot.lane.b32.xlu0 %v1530_v0, %s1479_s23 }
 0x169   : > { %v377_v19 = vpop.xlane.xlu0 %376 }
 0x16a   : > { %v382_v20 = vsub.f32 %v372_v15, %v377_v19 }
 0x16c   : > { %v384_v23 = vmul.f32 1.442695, %v382_v20 }
 0x16d   : > { %v381_v21 = vpop.xlane.xlu0 %380 }
 0x16e   : > { %v383_v22 = vsub.f32 %v373_v17, %v381_v21 }
 0x170   : > { %v386_v24 = vmul.f32 1.442695, %v383_v22 }
 0x171   : > { %v493_v31 = vpop.permute.xlu0 %492 }
 0x172   : > { %1423 = vpow2.f32 %v386_v24  ;;  %1350 = vmatprep.subr.msk.mxu1 %vm282_vm0, %v493_v31 }
 0x173   : > { %1425 = vpow2.f32 %v384_v23 }
 0x17f   : > { %v1424_v25 = vpop.eup %1423 }
 0x180   : > { %v391_v26 = vsel %vm378_vm7, %v1424_v25, 0.0  ;;  %v1426_v27 = vpop.eup %1425 }
 0x181   : > { %392 = vadd.xlane.f32.xlu1 %v391_v26  ;;  %v388_v28 = vsel %vm374_vm6, %v1426_v27, 0.0 }
 0x185   : > { %389 = vadd.xlane.f32.xlu1 %v388_v28 }
 0x196   : > { %488 = vrot.lane.b32.xlu1 %v1550_v3, %s1479_s23 }
 0x20a   : > { %v393_v34 = vpop.xlane.xlu1 %392 }
 0x20b   : > { %1427 = vrcp.f32 %v393_v34 }
 0x20e   : > { %v390_v35 = vpop.xlane.xlu1 %389 }
 0x20f   : > { %1429 = vrcp.f32 %v390_v35 }
 0x212   : > { %v489_v40 = vpop.permute.xlu1 %488 }
 0x218   : > { %v1428_v36 = vpop.eup %1427 }
 0x219   : > { %v397_v39 = vmul.f32 %v1428_v36, %v1424_v25 }
 0x21c   : > { %v1430_v37 = vpop.eup %1429 }
 0x21d   : > { %v396_v38 = vmul.f32 %v1430_v37, %v1426_v27 }
 0x21f   : > { %1347 = vmatprep.mubr.msk.f32.mxu1 %vm374_vm6, %v396_v38 }
 0x220   : > { %1348 = vmatmul.mubr.msk.f32.vlgmr.msra.gmra.mxu1 %vm374_vm6, %v397_v39 }
 0x221   : > { %1351 = vmatpush3.xpose.msk.msra.mxu1 %vm282_vm0, %v493_v31  ;;  %1354 = vmatprep.mubr.msk.f32.mxu1 %vm282_vm0, %v487_v33 }
 0x222   : > { %1352 = vmatprep.subr.msk.mxu1 %vm282_vm0, %v491_v32 }
 0x225   : > { %1353 = vmatpush3.xpose.msk.msra.mxu1 %vm282_vm0, %v491_v32 }
 0x228   : > { %1355 = vmatmul.mubr.msk.f32.vlgmr.msra.gmra.mxu1 %vm282_vm0, %v489_v40 }
 0x2e0   : > { %v1349_v41 = vpop.f32.mrf.mxu1 }
 0x2e1   : > { %485 = vst.msk [vmem:[%s1598_s29 + $0x8] sm:$0xf] %vm484_vm9, %v1349_v41 }
 0x2e2   : > { %v474_v42 = vpop.f32.mrf.mxu1 }
 0x2e3   : > { %483 = vst.msk [vmem:[%s1598_s29] sm:$0xff] %vm282_vm0, %v474_v42 }
 0x2e8   : > { %v1356_v43 = vpop.f32.mrf.mxu1 }
 0x2e9   : > { %v578_v44 = vmul.f32 0.35355338, %v1356_v43 }
 0x2ea   : > { %v568_v45 = vpop.f32.mrf.mxu1 }
 0x2eb   : > { %v577_v46 = vmul.f32 0.35355338, %v568_v45  ;;  %v580_v47 = vadd.f32 %v578_v44, %v1560_v14 }
 0x2ed   : > { %v584_v48 = vsel %vm378_vm7, %v580_v47, -inf  ;;  %v579_v49 = vadd.f32 %v577_v46, %v1558_v11 }
 0x2ee   : > { %585 = vmax.xlane.f32.xlu1 %v584_v48 }
 0x2ef   : > { %v581_v50 = vsel %vm374_vm6, %v579_v49, -inf }
 0x2f0   : > { %582 = vmax.xlane.f32.xlu0 %v581_v50 }
 0x2ff   : > { %604 = vrot.lane.b32.xlu1 %v1576_v30, %s1479_s23 }
 0x303   : > { %710 = vrot.lane.b32.xlu1 %v1530_v0, %s1481_s30 }
 0x307   : > { %708 = vrot.lane.b32.xlu1 %v1532_v1, %s1481_s30 }
 0x30b   : > { %706 = vrot.lane.b32.xlu1 %v1550_v3, %s1481_s30 }
 0x377   : > { %v586_v51 = vpop.xlane.xlu1 %585 }
 0x378   : > { %v588_v52 = vsub.f32 %v580_v47, %v586_v51 }
 0x379   : > { %v583_v53 = vpop.xlane.xlu0 %582 }
 0x37a   : > { %v591_v54 = vmul.f32 1.442695, %v588_v52  ;;  %v587_v55 = vsub.f32 %v579_v49, %v583_v53 }
 0x37b   : > { %v605_v63 = vpop.permute.xlu1 %604 }
 0x37c   : > { %1431 = vpow2.f32 %v591_v54  ;;  %v589_v56 = vmul.f32 1.442695, %v587_v55 }
 0x37e   : > { %1433 = vpow2.f32 %v589_v56 }
 0x37f   : > { %v711_v5 = vpop.permute.xlu1 %710 }
 0x383   : > { %v709_v12 = vpop.permute.xlu1 %708 }
 0x387   : > { %v707_v13 = vpop.permute.xlu1 %706 }
 0x389   : > { %v1432_v57 = vpop.eup %1431 }
 0x38a   : > { %v596_v58 = vsel %vm378_vm7, %v1432_v57, 0.0 }
 0x38b   : > { %v1434_v59 = vpop.eup %1433  ;;  %597 = vadd.xlane.f32.xlu0 %v596_v58 }
 0x38c   : > { %v593_v60 = vsel %vm374_vm6, %v1434_v59, 0.0 }
 0x38f   : > { %594 = vadd.xlane.f32.xlu0 %v593_v60 }
 0x3a5   : > { %606 = vrot.lane.b32.xlu0 %v1574_v29, %s1479_s23 }
 0x3a9   : > { %704 = vrot.lane.b32.xlu0 %v1540_v2, %s1481_s30 }
 0x414   : > { %v598_v61 = vpop.xlane.xlu0 %597 }
 0x415   : > { %1435 = vrcp.f32 %v598_v61 }
 0x418   : > { %v595_v62 = vpop.xlane.xlu0 %594 }
 0x419   : > { %1437 = vrcp.f32 %v595_v62 }
 0x41c   : > { %v607_v4 = vpop.permute.xlu0 %606 }
 0x41d   : > { %1357 = vmatprep.subr.msk.mxu0 %vm404_vm8, %v607_v4 }
 0x41e   : > { %1358 = vmatpush3.msk.msra.mxu0 %vm404_vm8, %v607_v4 }
 0x41f   : > { %1359 = vmatprep.subr.mxu0 %v605_v63 }
 0x420   : > { %1360 = vmatpush3.msra.mxu0 %v605_v63  ;;  %v705_v10 = vpop.permute.xlu0 %704 }
 0x421   : > { %1364 = vmatprep.subr.msk.mxu0 %vm282_vm0, %v711_v5 }
 0x422   : > { %v1436_v6 = vpop.eup %1435 }
 0x423   : > { %v602_v9 = vmul.f32 %v1436_v6, %v1432_v57 }
 0x426   : > { %v1438_v7 = vpop.eup %1437 }
 0x427   : > { %v601_v8 = vmul.f32 %v1438_v7, %v1434_v59 }
 0x429   : > { %1361 = vmatprep.mubr.msk.f32.mxu0 %vm374_vm6, %v601_v8 }
 0x42a   : > { %1362 = vmatmul.mubr.msk.f32.vlgmr.msra.gmra.mxu0 %vm374_vm6, %v602_v9 }
 0x42b   : > { %1365 = vmatpush3.xpose.msk.msra.mxu0 %vm282_vm0, %v711_v5  ;;  %1368 = vmatprep.mubr.msk.f32.mxu0 %vm282_vm0, %v705_v10 }
 0x42c   : > { %1366 = vmatprep.subr.msk.mxu0 %vm282_vm0, %v709_v12 }
 0x42f   : > { %1367 = vmatpush3.xpose.msk.msra.mxu0 %vm282_vm0, %v709_v12 }
 0x432   : > { %1369 = vmatmul.mubr.msk.f32.vlgmr.msra.gmra.mxu0 %vm282_vm0, %v707_v13 }
 0x4ea   : > { %v1631_v15 = vpop.f32.mrf.mxu0 }
 0x4ec   : > { %v1633_v16 = vpop.f32.mrf.mxu0 }
 0x4f2   : > { %v1370_v17 = vpop.f32.mrf.mxu0 }
 0x4f3   : > { %v796_v18 = vmul.f32 0.35355338, %v1370_v17 }
 0x4f4   : > { %v786_v19 = vpop.f32.mrf.mxu0 }
 0x4f5   : > { %v795_v20 = vmul.f32 0.35355338, %v786_v19  ;;  %v798_v21 = vadd.f32 %v796_v18, %v1560_v14 }
 0x4f7   : > { %v802_v22 = vsel %vm378_vm7, %v798_v21, -inf  ;;  %v797_v23 = vadd.f32 %v795_v20, %v1558_v11 }
 0x4f8   : > { %803 = vmax.xlane.f32.xlu1 %v802_v22 }
 0x4f9   : > { %v799_v24 = vsel %vm374_vm6, %v797_v23, -inf }
 0x4fa   : > { %800 = vmax.xlane.f32.xlu0 %v799_v24 }
 0x509   : > { %821 = vrot.lane.b32.xlu1 %v1576_v30, %s1481_s30 }
 0x50d   : > { %927 = vrot.lane.b32.xlu1 %v1530_v0, %s1482_s4 }
 0x511   : > { %925 = vrot.lane.b32.xlu1 %v1532_v1, %s1482_s4 }
 0x515   : > { %923 = vrot.lane.b32.xlu1 %v1550_v3, %s1482_s4 }
 0x581   : > { %v804_v25 = vpop.xlane.xlu1 %803 }
 0x582   : > { %v806_v26 = vsub.f32 %v798_v21, %v804_v25 }
 0x583   : > { %v801_v27 = vpop.xlane.xlu0 %800 }
 0x584   : > { %v809_v28 = vmul.f32 1.442695, %v806_v26  ;;  %v805_v31 = vsub.f32 %v797_v23, %v801_v27 }
 0x585   : > { %v822_v36 = vpop.permute.xlu1 %821 }
 0x586   : > { %1439 = vpow2.f32 %v809_v28  ;;  %v807_v32 = vmul.f32 1.442695, %v805_v31 }
 0x588   : > { %1441 = vpow2.f32 %v807_v32 }
 0x589   : > { %v928_v38 = vpop.permute.xlu1 %927 }
 0x58d   : > { %v926_v43 = vpop.permute.xlu1 %925 }
 0x591   : > { %v924_v44 = vpop.permute.xlu1 %923 }
 0x593   : > { %v1440_v33 = vpop.eup %1439 }
 0x594   : > { %v814_v34 = vsel %vm378_vm7, %v1440_v33, 0.0 }
 0x595   : > { %v1442_v35 = vpop.eup %1441  ;;  %815 = vadd.xlane.f32.xlu0 %v814_v34 }
 0x596   : > { %v811_v0 = vsel %vm374_vm6, %v1442_v35, 0.0 }
 0x599   : > { %812 = vadd.xlane.f32.xlu0 %v811_v0 }
 0x5af   : > { %823 = vrot.lane.b32.xlu0 %v1574_v29, %s1481_s30 }
 0x5b3   : > { %921 = vrot.lane.b32.xlu0 %v1540_v2, %s1482_s4 }
 0x61e   : > { %v816_v1 = vpop.xlane.xlu0 %815 }
 0x61f   : > { %1443 = vrcp.f32 %v816_v1 }
 0x622   : > { %v813_v3 = vpop.xlane.xlu0 %812 }
 0x623   : > { %1445 = vrcp.f32 %v813_v3 }
 0x626   : > { %v824_v37 = vpop.permute.xlu0 %823 }
 0x627   : > { %1371 = vmatprep.subr.msk.mxu1 %vm404_vm8, %v824_v37 }
 0x628   : > { %1372 = vmatpush3.msk.msra.mxu1 %vm404_vm8, %v824_v37 }
 0x629   : > { %1373 = vmatprep.subr.mxu1 %v822_v36 }
 0x62a   : > { %1374 = vmatpush3.msra.mxu1 %v822_v36  ;;  %v922_v2 = vpop.permute.xlu0 %921 }
 0x62b   : > { %1378 = vmatprep.subr.msk.mxu1 %vm282_vm0, %v928_v38 }
 0x62c   : > { %v1444_v39 = vpop.eup %1443 }
 0x62d   : > { %v820_v42 = vmul.f32 %v1444_v39, %v1440_v33 }
 0x630   : > { %v1446_v40 = vpop.eup %1445 }
 0x631   : > { %v819_v41 = vmul.f32 %v1446_v40, %v1442_v35 }
 0x633   : > { %1375 = vmatprep.mubr.msk.f32.mxu1 %vm374_vm6, %v819_v41 }
 0x634   : > { %1376 = vmatmul.mubr.msk.f32.vlgmr.msra.gmra.mxu1 %vm374_vm6, %v820_v42 }
 0x635   : > { %1379 = vmatpush3.xpose.msk.msra.mxu1 %vm282_vm0, %v928_v38  ;;  %1382 = vmatprep.mubr.msk.f32.mxu1 %vm282_vm0, %v922_v2 }
 0x636   : > { %1380 = vmatprep.subr.msk.mxu1 %vm282_vm0, %v926_v43 }
 0x639   : > { %1381 = vmatpush3.xpose.msk.msra.mxu1 %vm282_vm0, %v926_v43 }
 0x63c   : > { %1383 = vmatmul.mubr.msk.f32.vlgmr.msra.gmra.mxu1 %vm282_vm0, %v924_v44 }
 0x6f4   : > { %v1377_v45 = vpop.f32.mrf.mxu1 }
 0x6f6   : > { %v900_v46 = vpop.f32.mrf.mxu1 }
 0x6fc   : > { %v1384_v47 = vpop.f32.mrf.mxu1 }
 0x6fd   : > { %v1013_v48 = vmul.f32 0.35355338, %v1384_v47 }
 0x6fe   : > { %v1003_v49 = vpop.f32.mrf.mxu1 }
 0x6ff   : > { %v1012_v50 = vmul.f32 0.35355338, %v1003_v49  ;;  %v1015_v51 = vadd.f32 %v1013_v48, %v1560_v14 }
 0x701   : > { %v1014_v52 = vadd.f32 %v1012_v50, %v1558_v11  ;;  %v1019_v53 = vsel %vm378_vm7, %v1015_v51, -inf }
 0x702   : > { %1020 = vmax.xlane.f32.xlu1 %v1019_v53 }
 0x703   : > { %v1016_v54 = vsel %vm374_vm6, %v1014_v52, -inf }
 0x704   : > { %1017 = vmax.xlane.f32.xlu0 %v1016_v54 }
 0x713   : > { %1038 = vrot.lane.b32.xlu1 %v1576_v30, %s1482_s4 }
 0x717   : > { %694 = vrot.lane.b32.xlu1 %v1633_v16, %s1483_s5 }
 0x71b   : > { %696 = vrot.lane.b32.xlu1 %v1631_v15, %s1483_s5 }
 0x71f   : > { %913 = vrot.lane.b32.xlu1 %v1377_v45, %s1484_s6 }
 0x78b   : > { %v1021_v14 = vpop.xlane.xlu1 %1020 }
 0x78c   : > { %v1023_v11 = vsub.f32 %v1015_v51, %v1021_v14 }
 0x78d   : > { %v1018_v55 = vpop.xlane.xlu0 %1017 }
 0x78e   : > { %v1026_v56 = vmul.f32 1.442695, %v1023_v11  ;;  %v1022_v57 = vsub.f32 %v1014_v52, %v1018_v55 }
 0x78f   : > { %v1039_v58 = vpop.permute.xlu1 %1038 }
 0x790   : > { %1447 = vpow2.f32 %v1026_v56  ;;  %v1024_v59 = vmul.f32 1.442695, %v1022_v57 }
 0x792   : > { %1449 = vpow2.f32 %v1024_v59 }
 0x793   : > { %v695_v30 = vpop.permute.xlu1 %694 }
 0x794   : > { %701 = vst.msk [vmem:[%s1598_s29] sm:$0xff] %vm700_vm10, %v695_v30 }
 0x797   : > { %v697_v60 = vpop.permute.xlu1 %696 }
 0x798   : > { %703 = vst.msk [vmem:[%s1598_s29 + $0x8] sm:$0xf] %vm702_vm11, %v697_v60 }
 0x79b   : > { %v914_v61 = vpop.permute.xlu1 %913 }
 0x79c   : > { %920 = vst.msk [vmem:[%s1598_s29 + $0x8] sm:$0xf] %vm919_vm12, %v914_v61 }
 0x79d   : > { %v1448_v62 = vpop.eup %1447 }
 0x79e   : > { %v1031_v63 = vsel %vm378_vm7, %v1448_v62, 0.0 }
 0x79f   : > { %v1450_v4 = vpop.eup %1449  ;;  %1032 = vadd.xlane.f32.xlu0 %v1031_v63 }
 0x7a0   : > { %v1028_v5 = vsel %vm374_vm6, %v1450_v4, 0.0 }
 0x7a3   : > { %1029 = vadd.xlane.f32.xlu0 %v1028_v5 }
 0x7b9   : > { %1040 = vrot.lane.b32.xlu0 %v1574_v29, %s1482_s4 }
 0x7bd   : > { %911 = vrot.lane.b32.xlu0 %v900_v46, %s1484_s6 }
 0x828   : > { %v1033_v6 = vpop.xlane.xlu0 %1032 }
 0x829   : > { %1451 = vrcp.f32 %v1033_v6 }
 0x82c   : > { %v1030_v7 = vpop.xlane.xlu0 %1029 }
 0x82d   : > { %1453 = vrcp.f32 %v1030_v7 }
 0x830   : > { %v1041_v8 = vpop.permute.xlu0 %1040 }
 0x831   : > { %1385 = vmatprep.subr.msk.mxu0 %vm404_vm8, %v1041_v8 }
 0x832   : > { %1386 = vmatpush3.msk.msra.mxu0 %vm404_vm8, %v1041_v8 }
 0x833   : > { %1387 = vmatprep.subr.mxu0 %v1039_v58 }
 0x834   : > { %v912_v9 = vpop.permute.xlu0 %911  ;;  %1388 = vmatpush3.msra.mxu0 %v1039_v58 }
 0x835   : > { %918 = vst.msk [vmem:[%s1598_s29] sm:$0xff] %vm917_vm13, %v912_v9 }
 0x836   : > { %v1452_v10 = vpop.eup %1451 }
 0x837   : > { %v1037_v13 = vmul.f32 %v1452_v10, %v1448_v62 }
 0x83a   : > { %v1454_v12 = vpop.eup %1453 }
 0x83b   : > { %v1036_v29 = vmul.f32 %v1454_v12, %v1450_v4 }
 0x83d   : > { %1389 = vmatprep.mubr.msk.f32.mxu0 %vm374_vm6, %v1036_v29 }
 0x83e   : > { %1390 = vmatmul.mubr.msk.f32.vlgmr.msra.gmra.mxu0 %vm374_vm6, %v1037_v13 }
 0x8fe   : > { %v1391_v15 = vpop.f32.mrf.mxu0 }
 0x8ff   : > { %1130 = vrot.lane.b32.xlu1 %v1391_v15, %s1485_s7 }
 0x900   : > { %v1117_v16 = vpop.f32.mrf.mxu0 }
 0x901   : > { %1128 = vrot.lane.b32.xlu0 %v1117_v16, %s1485_s7 }
 0x971   : > { %v1131_v17 = vpop.permute.xlu1 %1130 }
 0x972   : > { %1137 = vst.msk [vmem:[%s1598_s29 + $0x8] sm:$0xf] %vm1136_vm14, %v1131_v17 }
 0x973   : > { %v1129_v18 = vpop.permute.xlu0 %1128 }
 0x974   : > { %1135 = vst.msk [vmem:[%s1598_s29] sm:$0xff] %vm1134_vm15, %v1129_v18 }
 0x975 PF: > { %s13_s14 = sadd.s32 1, %s1477_s14   ;;  %s1698_s12 = smov %s1473_s13 }
 0x976   : > { %p10_p5 = scmp.ge.s32.totalorder %s13_s14, 4   ;;  %s1699_s13 = smov %s1701_s15 }
 0x978   :  { %12 = sbr.rel (!%p10_p5) target bundleno = 2 (0x2), region = 68 }

// kernel: _lambda_.23
= control target key start
LH: loop header
LB: loop body
LE: loop exit
PB: predicated region body
PF: predicated region fallthrough
CT: control target
= control target key end

     0   :  { %vm18_vm0 = vcmask 523264   ;;  %v190_v0 = vmov 0.0   ;;  %vm32_vm1 = vcmask 261120   ;;  %vm191_vm2 = vmmov 0   ;;  %s254_s1 = inlined_call_operand.vmem [shape: f32[32,64], index: 1, kind: input, shape index: {}]   ;;  %s255_s0 = inlined_call_operand.vmem [shape: f32[24,32], index: 0, kind: input, shape index: {}]   ;;  %s256_s2 = inlined_call_operand.vmem [shape: f32[1,64], index: 2, kind: input, shape index: {}]   ;;  %s257_s3 = inlined_call_operand.vmem [shape: f32[24,64], index: 3, kind: output, shape index: {}]  }
   0x1   :  { %180 = vmatprep.subr.mxu1 %v190_v0  ;;  %v31_v1 = vld [vmem:[%s254_s1 + $0x18] sm:$0xff]  ;;  %163 = vmatprep.subr.mxu0 %v190_v0  ;;  %v30_v2 = vld [vmem:[%s254_s1 + $0x10] sm:$0xff]  ;;  %20 = vst.msk [vmem:[#allocation2 + $0x8] sm:$0xff] %vm18_vm0, %v190_v0  ;;  %19 = vst.msk [vmem:[#allocation2] sm:$0xff] %vm18_vm0, %v190_v0 }
   0x2   :  { %21 = vst.msk [vmem:[#allocation2 + $0x10] sm:$0xff] %vm18_vm0, %v190_v0  ;;  %184 = vmatpush3.msra.mxu1 %v31_v1  ;;  %164 = vmatpush3.msra.mxu0 %v31_v1  ;;  %v29_v3 = vld [vmem:[%s254_s1 + $0x8] sm:$0xff]  ;;  %v28_v4 = vld [vmem:[%s254_s1] sm:$0xff]  ;;  %v27_v7 = vld [vmem:[%s255_s0 + $0x10] sm:$0xff] }
   0x3   :  { %181 = vmatprep.subr.mxu1 %v190_v0  ;;  %165 = vmatprep.subr.mxu0 %v190_v0  ;;  %v26_v5 = vld [vmem:[%s255_s0 + $0x8] sm:$0xff]  ;;  %v25_v6 = vld [vmem:[%s255_s0] sm:$0xff] }
   0x4   :  { %185 = vmatpush3.msra.mxu1 %v30_v2  ;;  %166 = vmatpush3.msra.mxu0 %v30_v2  ;;  %v155_v20 = vld [vmem:[%s256_s2] ss:$0 sm:$0xff] }
   0x5   :  { %182 = vmatprep.subr.mxu1 %v190_v0  ;;  %167 = vmatprep.subr.mxu0 %v190_v0 }
   0x6   :  { %186 = vmatpush3.msra.mxu1 %v29_v3  ;;  %168 = vmatpush3.msra.mxu0 %v29_v3 }
   0x7   :  { %183 = vmatprep.subr.mxu1 %v190_v0  ;;  %174 = vmatprep.mubr.msk.f32.mxu1 %vm191_vm2, %v190_v0 }
   0x8   :  { %187 = vmatpush3.msra.mxu1 %v28_v4  ;;  %169 = vmatprep.subr.mxu0 %v190_v0  ;;  %v23_v8 = vld [vmem:[#allocation2 + $0x8] sm:$0xff]  ;;  %v22_v10 = vld [vmem:[#allocation2] sm:$0xff] }
   0x9   :  { %175 = vmatmul.mubr.msk.f32.vlgmr.msra.gmra.mxu1 %vm32_vm1, %v26_v5  ;;  %170 = vmatpush3.msra.mxu0 %v28_v4  ;;  %v24_v14 = vld [vmem:[#allocation2 + $0x10] sm:$0xff] }
   0xa   :  { %171 = vmatprep.mubr.msk.f32.mxu0 %vm191_vm2, %v190_v0  ;;  %177 = vmatprep.mubr.msk.f32.mxu1 %vm191_vm2, %v190_v0 }
   0xb   :  { %172 = vmatmul.mubr.msk.f32.vlgmr.msra.gmra.mxu0 %vm32_vm1, %v25_v6 }
   0xd   :  { %178 = vmatmul.mubr.msk.f32.gmra.mxu1 %vm32_vm1, %v27_v7 }
  0xc9   :  { %v113_v9 = vpop.f32.mrf.mxu1 }
  0xca   :  { %v123_v11 = vadd.f32 %v113_v9, %v23_v8 }
  0xcb   :  { %v108_v12 = vpop.f32.mrf.mxu0  ;;  %v176_v13 = vpop.f32.mrf.mxu1 }
  0xcc   :  { %127 = vst.msk [vmem:[#allocation2 + $0x8] sm:$0xff] %vm18_vm0, %v123_v11  ;;  %v122_v15 = vadd.f32 %v108_v12, %v22_v10 }
  0xcd   :  { %v173_v16 = vpop.f32.mrf.mxu0  ;;  %v118_v17 = vpop.f32.mrf.mxu1 }
  0xce   :  { %126 = vst.msk [vmem:[#allocation2] sm:$0xff] %vm18_vm0, %v122_v15  ;;  %v124_v18 = vadd.f32 %v118_v17, %v24_v14 }
  0xcf   :  { %v179_v19 = vpop.f32.mrf.mxu1 }
  0xd0   :  { %128 = vst.msk [vmem:[#allocation2 + $0x10] sm:$0xff] %vm18_vm0, %v124_v18 }
  0xd3   :  { %v133_v21 = vld [vmem:[#allocation2 + $0x8] sm:$0xff] }
  0xd4   :  { %v143_v22 = vadd.f32 %v155_v20, %v133_v21 }
  0xd5   :  { %v132_v23 = vld [vmem:[#allocation2] sm:$0xff] }
  0xd6   :  { %146 = vst.msk [vmem:[%s257_s3 + $0x8] sm:$0xff] %vm18_vm0, %v143_v22  ;;  %v142_v24 = vadd.f32 %v155_v20, %v132_v23 }
  0xd7   :  { %v134_v25 = vld [vmem:[#allocation2 + $0x10] sm:$0xff] }
  0xd8   :  { %145 = vst.msk [vmem:[%s257_s3] sm:$0xff] %vm18_vm0, %v142_v24  ;;  %v144_v26 = vadd.f32 %v155_v20, %v134_v25 }
  0xda   :  { %147 = vst.msk [vmem:[%s257_s3 + $0x10] sm:$0xff] %vm18_vm0, %v144_v26 }

// kernel: _lambda_.21
= control target key start
LH: loop header
LB: loop body
LE: loop exit
PB: predicated region body
PF: predicated region fallthrough
CT: control target
= control target key end

     0   :  { %vm18_vm0 = vcmask 261120   ;;  %v189_v0 = vmov 0.0   ;;  %vm190_vm1 = vmmov 0   ;;  %s256_s1 = inlined_call_operand.vmem [shape: f32[32,32], index: 1, kind: input, shape index: {}]   ;;  %s257_s0 = inlined_call_operand.vmem [shape: f32[24,32], index: 0, kind: input, shape index: {}]   ;;  %s258_s2 = inlined_call_operand.vmem [shape: f32[1,32], index: 2, kind: input, shape index: {}]   ;;  %s259_s3 = inlined_call_operand.vmem [shape: f32[24,32], index: 3, kind: output, shape index: {}]  }
   0x1   :  { %179 = vmatprep.subr.mxu1 %v189_v0  ;;  %v31_v1 = vld [vmem:[%s256_s1 + $0x18] sm:$0xff]  ;;  %162 = vmatprep.subr.mxu0 %v189_v0  ;;  %v30_v2 = vld [vmem:[%s256_s1 + $0x10] sm:$0xff]  ;;  %19 = vst.msk [vmem:[#allocation2] sm:$0xff] %vm18_vm0, %v189_v0  ;;  %20 = vst.msk [vmem:[#allocation2 + $0x8] sm:$0xff] %vm18_vm0, %v189_v0 }
   0x2   :  { %21 = vst.msk [vmem:[#allocation2 + $0x10] sm:$0xff] %vm18_vm0, %v189_v0  ;;  %183 = vmatpush3.msra.mxu1 %v31_v1  ;;  %163 = vmatpush3.msra.mxu0 %v31_v1  ;;  %v29_v3 = vld [vmem:[%s256_s1 + $0x8] sm:$0xff]  ;;  %v28_v4 = vld [vmem:[%s256_s1] sm:$0xff]  ;;  %v27_v7 = vld [vmem:[%s257_s0 + $0x10] sm:$0xff] }
   0x3   :  { %180 = vmatprep.subr.mxu1 %v189_v0  ;;  %164 = vmatprep.subr.mxu0 %v189_v0  ;;  %v26_v5 = vld [vmem:[%s257_s0 + $0x8] sm:$0xff]  ;;  %v25_v6 = vld [vmem:[%s257_s0] sm:$0xff] }
   0x4   :  { %184 = vmatpush3.msra.mxu1 %v30_v2  ;;  %165 = vmatpush3.msra.mxu0 %v30_v2  ;;  %v154_v20 = vld [vmem:[%s258_s2] ss:$0 sm:$0xff] }
   0x5   :  { %181 = vmatprep.subr.mxu1 %v189_v0  ;;  %166 = vmatprep.subr.mxu0 %v189_v0 }
   0x6   :  { %185 = vmatpush3.msra.mxu1 %v29_v3  ;;  %167 = vmatpush3.msra.mxu0 %v29_v3 }
   0x7   :  { %182 = vmatprep.subr.mxu1 %v189_v0  ;;  %173 = vmatprep.mubr.msk.f32.mxu1 %vm190_vm1, %v189_v0 }
   0x8   :  { %186 = vmatpush3.msra.mxu1 %v28_v4  ;;  %168 = vmatprep.subr.mxu0 %v189_v0  ;;  %v23_v8 = vld [vmem:[#allocation2 + $0x8] sm:$0xff]  ;;  %v22_v10 = vld [vmem:[#allocation2] sm:$0xff] }
   0x9   :  { %174 = vmatmul.mubr.msk.f32.vlgmr.msra.gmra.mxu1 %vm18_vm0, %v26_v5  ;;  %169 = vmatpush3.msra.mxu0 %v28_v4  ;;  %v24_v14 = vld [vmem:[#allocation2 + $0x10] sm:$0xff] }
   0xa   :  { %170 = vmatprep.mubr.msk.f32.mxu0 %vm190_vm1, %v189_v0  ;;  %176 = vmatprep.mubr.msk.f32.mxu1 %vm190_vm1, %v189_v0 }
   0xb   :  { %171 = vmatmul.mubr.msk.f32.vlgmr.msra.gmra.mxu0 %vm18_vm0, %v25_v6 }
   0xd   :  { %177 = vmatmul.mubr.msk.f32.gmra.mxu1 %vm18_vm0, %v27_v7 }
  0xc9   :  { %v113_v9 = vpop.f32.mrf.mxu1 }
  0xca   :  { %v123_v11 = vadd.f32 %v113_v9, %v23_v8 }
  0xcb   :  { %v108_v12 = vpop.f32.mrf.mxu0  ;;  %v175_v13 = vpop.f32.mrf.mxu1 }
  0xcc   :  { %126 = vst.msk [vmem:[#allocation2 + $0x8] sm:$0xff] %vm18_vm0, %v123_v11  ;;  %v122_v15 = vadd.f32 %v108_v12, %v22_v10 }
  0xcd   :  { %v172_v16 = vpop.f32.mrf.mxu0  ;;  %v118_v17 = vpop.f32.mrf.mxu1 }
  0xce   :  { %125 = vst.msk [vmem:[#allocation2] sm:$0xff] %vm18_vm0, %v122_v15  ;;  %v124_v18 = vadd.f32 %v118_v17, %v24_v14 }
  0xcf   :  { %v178_v19 = vpop.f32.mrf.mxu1 }
  0xd0   :  { %127 = vst.msk [vmem:[#allocation2 + $0x10] sm:$0xff] %vm18_vm0, %v124_v18 }
  0xd3   :  { %v132_v21 = vld [vmem:[#allocation2 + $0x8] sm:$0xff] }
  0xd4   :  { %v142_v22 = vadd.f32 %v154_v20, %v132_v21 }
  0xd5   :  { %v131_v23 = vld [vmem:[#allocation2] sm:$0xff] }
  0xd6   :  { %145 = vst.msk [vmem:[%s259_s3 + $0x8] sm:$0xff] %vm18_vm0, %v142_v22  ;;  %v141_v24 = vadd.f32 %v154_v20, %v131_v23 }
  0xd7   :  { %v133_v25 = vld [vmem:[#allocation2 + $0x10] sm:$0xff] }
  0xd8   :  { %144 = vst.msk [vmem:[%s259_s3] sm:$0xff] %vm18_vm0, %v141_v24  ;;  %v143_v26 = vadd.f32 %v154_v20, %v133_v25 }
  0xda   :  { %146 = vst.msk [vmem:[%s259_s3 + $0x10] sm:$0xff] %vm18_vm0, %v143_v26 }

// kernel: _lambda_.22
= control target key start
LH: loop header
LB: loop body
LE: loop exit
PB: predicated region body
PF: predicated region fallthrough
CT: control target
= control target key end

     0   :  { %s528_s15 = smov 0   ;;  %s530_s16 = smov 0   ;;  %s581_s0 = inlined_call_operand.vmem [shape: f32[2,12,32], index: 0, kind: input, shape index: {}]   ;;  %s582_s1 = inlined_call_operand.vmem [shape: f32[2,12,32], index: 1, kind: input, shape index: {}]   ;;  %s583_s2 = inlined_call_operand.vmem [shape: f32[1,1,32], index: 2, kind: input, shape index: {}]   ;;  %s584_s3 = inlined_call_operand.vmem [shape: f32[1,1,32], index: 3, kind: input, shape index: {}]   ;;  %s585_s4 = inlined_call_operand.vmem [shape: f32[2,12,32], index: 4, kind: output, shape index: {}]  }
   0x1   :  { %s532_s17 = smov 0  }
   0x2 LB: > { %s26_s18 = sadd.s32 1, %s497_s16  ;;  %p437_p0 = scmp.ge.s32.totalorder %s501_s17, 1  ;;  %s501_s17 = sphi %s532_s17, %s14_s17   ;;  %s497_s16 = sphi %s530_s16, %s587_s16   ;;  %s493_s15 = sphi %s528_s15, %s586_s15  }
   0x3   : > { %p28_p1 = scmp.ge.s32.totalorder %s26_s18, 2  ;;  %p200_p2 = scmp.lt.s32.totalorder %s501_s17, 3 }
   0x5   : > { %s589_s18 = smov (%p28_p1, %s26_s18), 0  ;;  %p201_p3 = pnand %p437_p0, %p200_p2 }
   0x6   : > { %p244_p4 = scmp.lt.s32.totalorder (!%p201_p3), %s493_s15, 1 }
   0x7   : > { %204 = sbr.rel (%p201_p3) target bundleno = 332 (0x14c), region = 36 }
   0xc   : > { %s591_s15 = smov (!%p244_p4, %s493_s15), 1  ;;  %vm279_vm0 = vcmask 261120   ;;  %vm283_vm1 = vcmask 257024   ;;  %v444_v25 = vld [vmem:[%s583_s2] ss:$0 sm:$0xff] }
   0xd   : > { %s546_s19 = sshll.u32 %s591_s15, 4  ;;  %v445_v27 = vld [vmem:[%s584_s3] ss:$0 sm:$0xff] }
   0xe   : > { %s251_s22 = scalar_lea.vmem %s581_s0, %s546_s19  ;;  %s261_s25 = scalar_lea.vmem %s582_s1, %s546_s19 }
   0xf   : > { %v273_v0 = vld [vmem:[%s251_s22] sm:$0xff]  ;;  %v274_v2 = vld [vmem:[%s251_s22 + $0x8] sm:$0xf]  ;;  %s271_s6 = scalar_lea.vmem %s585_s4, %s546_s19 }
  0x10   : > { %v275_v1 = vld [vmem:[%s261_s25] sm:$0xff]  ;;  %v276_v4 = vld [vmem:[%s261_s25 + $0x8] sm:$0xf] }
  0x11   : > { %v277_v3 = vadd.f32 %v275_v1, %v273_v0  ;;  %v278_v5 = vadd.f32 %v276_v4, %v274_v2 }
  0x13   : > { %v280_v6 = vsel %vm279_vm0, %v277_v3, 0.0  ;;  %v284_v7 = vsel %vm283_vm1, %v278_v5, 0.0 }
  0x14   : > { %281 = vadd.xlane.f32.xlu0 %v280_v6 }
  0x18   : > { %285 = vadd.xlane.f32.xlu0 %v284_v7 }
  0x9d   : > { %v282_v8 = vpop.xlane.xlu0 %281 }
  0x9e   : > { %v288_v9 = vmul.f32 0.03125, %v282_v8 }
  0xa0   : > { %v290_v10 = vsub.f32 %v277_v3, %v288_v9 }
  0xa1   : > { %v286_v11 = vpop.xlane.xlu0 %285 }
  0xa2   : > { %v289_v12 = vmul.f32 0.03125, %v286_v11  ;;  %v292_v13 = vmul.f32 %v290_v10, %v290_v10 }
  0xa4   : > { %v291_v14 = vsub.f32 %v278_v5, %v289_v12  ;;  %v294_v15 = vsel %vm279_vm0, %v292_v13, 0.0 }
  0xa5   : > { %295 = vadd.xlane.f32.xlu1 %v294_v15 }
  0xa6   : > { %v293_v16 = vmul.f32 %v291_v14, %v291_v14 }
  0xa8   : > { %v297_v17 = vsel %vm283_vm1, %v293_v16, 0.0 }
  0xa9   : > { %298 = vadd.xlane.f32.xlu1 %v297_v17 }
 0x12e   : > { %v296_v18 = vpop.xlane.xlu1 %295 }
 0x12f   : > { %v300_v19 = vmul.f32 0.03125, %v296_v18 }
 0x131   : > { %v302_v20 = vadd.f32 1e-12, %v300_v19 }
 0x132   : > { %v299_v21 = vpop.xlane.xlu1 %298 }
 0x133   : > { %475 = vrsqrt.f32 %v302_v20  ;;  %v301_v22 = vmul.f32 0.03125, %v299_v21 }
 0x135   : > { %v303_v23 = vadd.f32 1e-12, %v301_v22 }
 0x137   : > { %477 = vrsqrt.f32 %v303_v23 }
 0x140   : > { %v476_v24 = vpop.eup %475 }
 0x141   : > { %v306_v26 = vmul.f32 %v476_v24, %v290_v10 }
 0x143   : > { %v315_v28 = vmul.f32 %v444_v25, %v306_v26 }
 0x144   : > { %v478_v29 = vpop.eup %477 }
 0x145   : > { %v324_v30 = vadd.f32 %v445_v27, %v315_v28  ;;  %v307_v31 = vmul.f32 %v478_v29, %v291_v14 }
 0x147   : > { %326 = vst.msk [vmem:[%s271_s6] sm:$0xff] %vm279_vm0, %v324_v30  ;;  %v316_v32 = vmul.f32 %v444_v25, %v307_v31 }
 0x149   : > { %v325_v33 = vadd.f32 %v445_v27, %v316_v32 }
 0x14b   : > { %327 = vst.msk [vmem:[%s271_s6 + $0x8] sm:$0xf] %vm283_vm1, %v325_v33 }
 0x14c PF: > { %s14_s17 = sadd.s32 1, %s501_s17   ;;  %s586_s15 = smov %s497_s16 }
 0x14d   : > { %p11_p5 = scmp.ge.s32.totalorder %s14_s17, 4   ;;  %s587_s16 = smov %s589_s18 }
 0x14f   :  { %13 = sbr.rel (!%p11_p5) target bundleno = 2 (0x2), region = 69 }

// kernel: _lambda_.24
= control target key start
LH: loop header
LB: loop body
LE: loop exit
PB: predicated region body
PF: predicated region fallthrough
CT: control target
= control target key end

     0   :  { %vm18_vm0 = vcmask 261120   ;;  %v214_v0 = vmov 0.0   ;;  %vm36_vm1 = vcmask 523264   ;;  %vm215_vm2 = vmmov 0   ;;  %s290_s1 = inlined_call_operand.vmem [shape: f32[64,32], index: 1, kind: input, shape index: {}]   ;;  %s291_s0 = inlined_call_operand.vmem [shape: f32[24,64], index: 0, kind: input, shape index: {}]   ;;  %s292_s2 = inlined_call_operand.vmem [shape: f32[1,32], index: 2, kind: input, shape index: {}]   ;;  %s293_s3 = inlined_call_operand.vmem [shape: f32[24,32], index: 3, kind: output, shape index: {}]  }
   0x1   :  { %196 = vmatprep.subr.mxu1 %v214_v0  ;;  %v35_v1 = vld [vmem:[%s290_s1 + $0x38] sm:$0xff]  ;;  %171 = vmatprep.subr.mxu0 %v214_v0  ;;  %v34_v2 = vld [vmem:[%s290_s1 + $0x30] sm:$0xff]  ;;  %20 = vst.msk [vmem:[#allocation2 + $0x8] sm:$0xff] %vm18_vm0, %v214_v0  ;;  %19 = vst.msk [vmem:[#allocation2] sm:$0xff] %vm18_vm0, %v214_v0 }
   0x2   :  { %21 = vst.msk [vmem:[#allocation2 + $0x10] sm:$0xff] %vm18_vm0, %v214_v0  ;;  %204 = vmatpush3.msra.mxu1 %v35_v1  ;;  %172 = vmatpush3.msra.mxu0 %v35_v1  ;;  %v33_v3 = vld [vmem:[%s290_s1 + $0x28] sm:$0xff]  ;;  %v32_v4 = vld [vmem:[%s290_s1 + $0x20] sm:$0xff]  ;;  %v31_v5 = vld [vmem:[%s290_s1 + $0x18] sm:$0xff] }
   0x3   :  { %197 = vmatprep.subr.mxu1 %v214_v0  ;;  %173 = vmatprep.subr.mxu0 %v214_v0  ;;  %v30_v6 = vld [vmem:[%s290_s1 + $0x10] sm:$0xff]  ;;  %v29_v7 = vld [vmem:[%s290_s1 + $0x8] sm:$0xff]  ;;  %v28_v8 = vld [vmem:[%s290_s1] sm:$0xff] }
   0x4   :  { %205 = vmatpush3.msra.mxu1 %v34_v2  ;;  %174 = vmatpush3.msra.mxu0 %v34_v2  ;;  %v26_v9 = vld [vmem:[%s291_s0 + $0x8] sm:$0xff]  ;;  %v25_v10 = vld [vmem:[%s291_s0] sm:$0xff]  ;;  %v27_v11 = vld [vmem:[%s291_s0 + $0x10] sm:$0xff] }
   0x5   :  { %198 = vmatprep.subr.mxu1 %v214_v0  ;;  %175 = vmatprep.subr.mxu0 %v214_v0  ;;  %v159_v24 = vld [vmem:[%s292_s2] ss:$0 sm:$0xff] }
   0x6   :  { %206 = vmatpush3.msra.mxu1 %v33_v3  ;;  %176 = vmatpush3.msra.mxu0 %v33_v3 }
   0x7   :  { %199 = vmatprep.subr.mxu1 %v214_v0  ;;  %177 = vmatprep.subr.mxu0 %v214_v0 }
   0x8   :  { %207 = vmatpush3.msra.mxu1 %v32_v4  ;;  %178 = vmatpush3.msra.mxu0 %v32_v4  ;;  %v23_v12 = vld [vmem:[#allocation2 + $0x8] sm:$0xff]  ;;  %v22_v14 = vld [vmem:[#allocation2] sm:$0xff] }
   0x9   :  { %200 = vmatprep.subr.mxu1 %v214_v0  ;;  %179 = vmatprep.subr.mxu0 %v214_v0  ;;  %v24_v18 = vld [vmem:[#allocation2 + $0x10] sm:$0xff] }
   0xa   :  { %208 = vmatpush3.msra.mxu1 %v31_v5  ;;  %180 = vmatpush3.msra.mxu0 %v31_v5 }
   0xb   :  { %201 = vmatprep.subr.mxu1 %v214_v0  ;;  %181 = vmatprep.subr.mxu0 %v214_v0 }
   0xc   :  { %209 = vmatpush3.msra.mxu1 %v30_v6  ;;  %182 = vmatpush3.msra.mxu0 %v30_v6 }
   0xd   :  { %202 = vmatprep.subr.mxu1 %v214_v0  ;;  %183 = vmatprep.subr.mxu0 %v214_v0 }
   0xe   :  { %210 = vmatpush3.msra.mxu1 %v29_v7  ;;  %184 = vmatpush3.msra.mxu0 %v29_v7 }
   0xf   :  { %203 = vmatprep.subr.mxu1 %v214_v0  ;;  %190 = vmatprep.mubr.msk.f32.mxu1 %vm215_vm2, %v214_v0 }
  0x10   :  { %211 = vmatpush3.msra.mxu1 %v28_v8  ;;  %185 = vmatprep.subr.mxu0 %v214_v0 }
  0x11   :  { %191 = vmatmul.mubr.msk.f32.vlgmr.msra.gmra.mxu1 %vm36_vm1, %v26_v9  ;;  %186 = vmatpush3.msra.mxu0 %v28_v8 }
  0x12   :  { %187 = vmatprep.mubr.msk.f32.mxu0 %vm215_vm2, %v214_v0  ;;  %193 = vmatprep.mubr.msk.f32.mxu1 %vm215_vm2, %v214_v0 }
  0x13   :  { %188 = vmatmul.mubr.msk.f32.vlgmr.msra.gmra.mxu0 %vm36_vm1, %v25_v10 }
  0x15   :  { %194 = vmatmul.mubr.msk.f32.gmra.mxu1 %vm36_vm1, %v27_v11 }
  0xd1   :  { %v117_v13 = vpop.f32.mrf.mxu1 }
  0xd2   :  { %v127_v15 = vadd.f32 %v117_v13, %v23_v12 }
  0xd3   :  { %v112_v16 = vpop.f32.mrf.mxu0  ;;  %v192_v17 = vpop.f32.mrf.mxu1 }
  0xd4   :  { %131 = vst.msk [vmem:[#allocation2 + $0x8] sm:$0xff] %vm18_vm0, %v127_v15  ;;  %v126_v19 = vadd.f32 %v112_v16, %v22_v14 }
  0xd5   :  { %v189_v20 = vpop.f32.mrf.mxu0  ;;  %v122_v21 = vpop.f32.mrf.mxu1 }
  0xd6   :  { %130 = vst.msk [vmem:[#allocation2] sm:$0xff] %vm18_vm0, %v126_v19  ;;  %v128_v22 = vadd.f32 %v122_v21, %v24_v18 }
  0xd7   :  { %v195_v23 = vpop.f32.mrf.mxu1 }
  0xd8   :  { %132 = vst.msk [vmem:[#allocation2 + $0x10] sm:$0xff] %vm18_vm0, %v128_v22 }
  0xdb   :  { %v137_v25 = vld [vmem:[#allocation2 + $0x8] sm:$0xff] }
  0xdc   :  { %v147_v26 = vadd.f32 %v159_v24, %v137_v25 }
  0xdd   :  { %v136_v27 = vld [vmem:[#allocation2] sm:$0xff] }
  0xde   :  { %150 = vst.msk [vmem:[%s293_s3 + $0x8] sm:$0xff] %vm18_vm0, %v147_v26  ;;  %v146_v28 = vadd.f32 %v159_v24, %v136_v27 }
  0xdf   :  { %v138_v29 = vld [vmem:[#allocation2 + $0x10] sm:$0xff] }
  0xe0   :  { %149 = vst.msk [vmem:[%s293_s3] sm:$0xff] %vm18_vm0, %v146_v28  ;;  %v148_v30 = vadd.f32 %v159_v24, %v138_v29 }
  0xe2   :  { %151 = vst.msk [vmem:[%s293_s3 + $0x10] sm:$0xff] %vm18_vm0, %v148_v30 }

// kernel: _lambda_.33
= control target key start
LH: loop header
LB: loop body
LE: loop exit
PB: predicated region body
PF: predicated region fallthrough
CT: control target
= control target key end

     0   :  { %vm38_vm0 = vcmask 261120   ;;  %vm19_vm1 = vcmask 785408   ;;  %v275_v2 = vmov 0.0   ;;  %s379_s0 = inlined_call_operand.vmem [shape: f32[16,32], index: 0, kind: input, shape index: {}]   ;;  %s380_s1 = inlined_call_operand.vmem [shape: f32[96,32], index: 1, kind: input, shape index: {}]   ;;  %s381_s2 = inlined_call_operand.vmem [shape: f32[1,96], index: 2, kind: input, shape index: {}]   ;;  %s382_s3 = inlined_call_operand.hbm [shape: f32[16,96], index: 3, kind: output, shape index: {}]  }
   0x1   :  { %v37_v0 = vld [vmem:[%s380_s1 + $0x58] sm:$0xff]  ;;  %v36_v1 = vld [vmem:[%s380_s1 + $0x50] sm:$0xff]  ;;  %21 = vst.msk [vmem:[#allocation2 + $0x8] sm:$0xff] %vm19_vm1, %v275_v2  ;;  %20 = vst.msk [vmem:[#allocation2] sm:$0xff] %vm19_vm1, %v275_v2 }
   0x2   :  { %222 = vmatprep.subr.msk.mxu0 %vm38_vm0, %v37_v0  ;;  %v35_v3 = vld [vmem:[%s380_s1 + $0x48] sm:$0xff]  ;;  %v24_v4 = vld [vmem:[%s379_s0] sm:$0xff] }
   0x3   :  { %223 = vmatpush3.xpose.msk.msra.mxu0 %vm38_vm0, %v37_v0 }
   0x4   :  { %224 = vmatprep.subr.msk.mxu0 %vm38_vm0, %v36_v1 }
   0x5   :  { %8 = vsyncpa [#allocation4], 0  ;;  %246 = vmatprep.mubr.msk.f32.mxu0 %vm38_vm0, %v24_v4  ;;  %v34_v5 = vld [vmem:[%s380_s1 + $0x40] sm:$0xff]  ;;  %v33_v6 = vld [vmem:[%s380_s1 + $0x38] sm:$0xff]  ;;  %s276_s14 = smov [#allocation3]  }
   0x6   :  { %v32_v7 = vld [vmem:[%s380_s1 + $0x30] sm:$0xff]  ;;  %v31_v8 = vld [vmem:[%s380_s1 + $0x28] sm:$0xff]  ;;  %v30_v9 = vld [vmem:[%s380_s1 + $0x20] sm:$0xff]  ;;  %s182_s15 = sshll.u32 %s276_s14, 4  ;;  %s183_s15 = int_to_ptr.vmem [resolvable:$true] %s182_s15 }
   0x7   :  { %225 = vmatpush3.xpose.msk.msra.mxu0 %vm38_vm0, %v36_v1  ;;  %v29_v10 = vld [vmem:[%s380_s1 + $0x18] sm:$0xff]  ;;  %v28_v11 = vld [vmem:[%s380_s1 + $0x10] sm:$0xff]  ;;  %v27_v12 = vld [vmem:[%s380_s1 + $0x8] sm:$0xff]  ;;  %p258_p1 = scmp.lt.s32.totalorder %s183_s15, %s183_s15 }
   0x8   :  { %226 = vmatprep.subr.msk.mxu0 %vm38_vm0, %v35_v3  ;;  %v26_v13 = vld [vmem:[%s380_s1] sm:$0xff]  ;;  %v25_v14 = vld [vmem:[%s379_s0 + $0x8] sm:$0xff]  ;;  %s253_s0 = scalar_lea.vmem %s183_s15, 256 }
   0x9   :  { %v23_v15 = vld [vmem:[#allocation2 + $0x8] sm:$0xff]  ;;  %v22_v17 = vld [vmem:[#allocation2] sm:$0xff]  ;;  %p254_p0 = scmp.ne.s32.totalorder %s183_s15, %s253_s0  ;;  %p259_p2 = scmp.lt.s32.totalorder %s253_s0, %s253_s0 }
   0xa   :  { %v207_v21 = vld [vmem:[%s381_s2] ss:$0 sm:$0xff] }
   0xb   :  { %227 = vmatpush3.xpose.msk.msra.mxu0 %vm38_vm0, %v35_v3  ;;  %p260_p3 = por %p259_p2, %p258_p1 }
   0xc   :  { %228 = vmatprep.subr.msk.mxu0 %vm38_vm0, %v34_v5 }
   0xd   :  { %p261_p4 = pnand %p260_p3, %p254_p0 }
   0xf   :  { %229 = vmatpush3.xpose.msk.msra.mxu0 %vm38_vm0, %v34_v5 }
  0x10   :  { %230 = vmatprep.subr.msk.mxu0 %vm38_vm0, %v33_v6 }
  0x13   :  { %231 = vmatpush3.xpose.msk.msra.mxu0 %vm38_vm0, %v33_v6 }
  0x14   :  { %232 = vmatprep.subr.msk.mxu0 %vm38_vm0, %v32_v7 }
  0x17   :  { %233 = vmatpush3.xpose.msk.msra.mxu0 %vm38_vm0, %v32_v7 }
  0x18   :  { %234 = vmatprep.subr.msk.mxu0 %vm38_vm0, %v31_v8 }
  0x1b   :  { %235 = vmatpush3.xpose.msk.msra.mxu0 %vm38_vm0, %v31_v8 }
  0x1c   :  { %236 = vmatprep.subr.msk.mxu0 %vm38_vm0, %v30_v9 }
  0x1f   :  { %237 = vmatpush3.xpose.msk.msra.mxu0 %vm38_vm0, %v30_v9 }
  0x20   :  { %238 = vmatprep.subr.msk.mxu0 %vm38_vm0, %v29_v10 }
  0x23   :  { %239 = vmatpush3.xpose.msk.msra.mxu0 %vm38_vm0, %v29_v10 }
  0x24   :  { %240 = vmatprep.subr.msk.mxu0 %vm38_vm0, %v28_v11 }
  0x27   :  { %241 = vmatpush3.xpose.msk.msra.mxu0 %vm38_vm0, %v28_v11 }
  0x28   :  { %242 = vmatprep.subr.msk.mxu0 %vm38_vm0, %v27_v12 }
  0x2b   :  { %243 = vmatpush3.xpose.msk.msra.mxu0 %vm38_vm0, %v27_v12 }
  0x2c   :  { %244 = vmatprep.subr.msk.mxu0 %vm38_vm0, %v26_v13 }
  0x2f   :  { %245 = vmatpush3.xpose.msk.msra.mxu0 %vm38_vm0, %v26_v13 }
  0x32   :  { %247 = vmatmul.mubr.msk.f32.vlgmr.msra.gmra.mxu0 %vm38_vm0, %v25_v14 }
  0xf2   :  { %v248_v16 = vpop.f32.mrf.mxu0 }
  0xf3   :  { %v157_v18 = vadd.f32 %v248_v16, %v23_v15 }
  0xf4   :  { %v147_v19 = vpop.f32.mrf.mxu0 }
  0xf5   :  { %160 = vst.msk [vmem:[#allocation2 + $0x8] sm:$0xff] %vm19_vm1, %v157_v18  ;;  %v156_v20 = vadd.f32 %v147_v19, %v22_v17 }
  0xf7   :  { %159 = vst.msk [vmem:[#allocation2] sm:$0xff] %vm19_vm1, %v156_v20 }
  0xfc   :  { %v165_v22 = vld [vmem:[#allocation2 + $0x8] sm:$0xff] }
  0xfd   :  { %v174_v23 = vadd.f32 %v207_v21, %v165_v22 }
  0xfe   :  { %v164_v24 = vld [vmem:[#allocation2] sm:$0xff] }
  0xff   :  { %v173_v25 = vadd.f32 %v207_v21, %v164_v24  ;;  %176 = vst.msk [vmem:[#allocation3 + $0x8] sm:$0xff] %vm19_vm1, %v174_v23 }
 0x101   :  { %175 = vst.msk [vmem:[#allocation3] sm:$0xff] %vm19_vm1, %v173_v25 }
 0x102   :  { %264 = shalt.err (!%p261_p4)
}
 0x103   :  { %s277_s16 = smov 128   ;;  %s278_s2 = smov 8  }
 0x104   :  { %188 = dma.vmem_to_hbm [thread:$0]  %s183_s15, 256, %s382_s3, [#allocation4], %s277_s16, %s277_s16, %s278_s2  }
 0x105   :  { %273 = dma.done.wait [#allocation4], 256  }
 0x106   :  { %274 = vsyncadd [#allocation4], 4294967040 }
 0x107   :  { %192 = vsyncpa [#allocation4], 1 }

</bundles_post_ra>
